<compile_context>
chip_gen: v7x
topology: tpu7x:2x2x1
jax: 0.10.0
libtpu: 0.0.40
codegen_flags: <defaults>
</compile_context>

<pallas_src>
import functools

import jax
import jax.numpy as jnp
from jax import lax
from jax.experimental import pallas as pl
from jax.experimental.pallas import tpu as pltpu

EPS = 1e-5
LANE = 128
SUBLANE = 8
VMEM_LIMIT = 32 * 1024 * 1024      # explicit scoped-VMEM ceiling (all gens OK)
STREAM_BUDGET = 12 * 1024 * 1024   # bytes for double-buffered patch + out tiles
MAX_TILE_M = 2048


def _round_up(x, m):
    return (x + m - 1) // m * m


def _pick_tile_m(M8, Kp, Cp):
    """Per-layer M tile: as large as the VMEM streaming budget allows, but keep
    >=2 grid steps when there is enough work (DMA/compute overlap and v7x
    megacore sharding of the 'parallel' M axis)."""
    row_bytes = 2 * 2 * (Kp + Cp)            # 2 buffers x bf16 x (patch + out) row
    tm = max(SUBLANE, min(MAX_TILE_M, STREAM_BUDGET // row_bytes))
    tm = (tm // SUBLANE) * SUBLANE
    tm = min(tm, M8)
    if tm >= M8 and M8 >= 2 * SUBLANE:       # split so both TensorCores get work
        tm = _round_up((M8 + 1) // 2, SUBLANE)
    return tm


# ----------------------------------------------------------------------------
# Pallas kernel: out = act( patches @ W + shift )   (BN scale folded into W)
# ----------------------------------------------------------------------------
def _matmul_bias_act_kernel(p_ref, w_ref, b_ref, o_ref, *, slope):
    # bf16 operands, f32 accumulate on the MXU; epilogue stays in f32.
    acc = jnp.dot(p_ref[...], w_ref[...], preferred_element_type=jnp.float32)
    y = acc + b_ref[...]
    if slope != 1.0:                         # slope == 1.0 -> identity
        y = jnp.where(y >= 0, y, slope * y)
    o_ref[...] = y.astype(o_ref.dtype)


def matmul_bias_act(patches_bf16, w_bf16, shift, *, slope):
    """act(patches @ w + shift).

    patches: (M, K) bf16 ; w: (K, Cout) bf16 (scale pre-folded) ;
    shift: (Cout,) f32.  Pads K / Cout to lane-dense multiples of 128, tiles
    and pipelines over M, returns (M, Cout) bf16.
    """
    M, K = patches_bf16.shape
    Cout = w_bf16.shape[1]

    Kp = _round_up(K, LANE)
    Cp = _round_up(Cout, LANE)
    M8 = _round_up(M, SUBLANE)
    tm = _pick_tile_m(M8, Kp, Cp)
    Mp = _round_up(M8, tm)
    grid_m = Mp // tm

    # Zero-fill all padding so padded lanes never leak into real outputs.
    p = jnp.pad(patches_bf16, ((0, Mp - M), (0, Kp - K)))
    w = jnp.pad(w_bf16, ((0, Kp - K), (0, Cp - Cout)))
    b = jnp.pad(shift.astype(jnp.float32), (0, Cp - Cout)).reshape(1, Cp)

    kernel = functools.partial(_matmul_bias_act_kernel, slope=slope)
    cost = pl.CostEstimate(
        flops=2 * Mp * Kp * Cp,
        transcendentals=0,
        bytes_accessed=p.size * 2 + w.size * 2 + b.size * 4 + Mp * Cp * 2,
    )

    out = pl.pallas_call(
        kernel,
        out_shape=jax.ShapeDtypeStruct((Mp, Cp), jnp.bfloat16),
        grid=(grid_m,),
        in_specs=[
            pl.BlockSpec((tm, Kp), lambda i: (i, 0)),   # patches: streamed over M
            pl.BlockSpec((Kp, Cp), lambda i: (0, 0)),   # weight: VMEM-resident
            pl.BlockSpec((1, Cp), lambda i: (0, 0)),    # shift: resident
        ],
        out_specs=pl.BlockSpec((tm, Cp), lambda i: (i, 0)),
        compiler_params=pltpu.CompilerParams(
            dimension_semantics=("parallel",),          # megacore shard on v7x
            vmem_limit_bytes=VMEM_LIMIT,
        ),
        cost_estimate=cost,
    )(p, w, b)

    return out[:M, :Cout]


# ----------------------------------------------------------------------------
# Pallas kernel for the Cout == 1 head: VPU multiply + lane reduction
# ----------------------------------------------------------------------------
def _head_kernel(p_ref, w_ref, o_ref):
    prod = p_ref[...].astype(jnp.float32) * w_ref[...]
    o_ref[...] = jnp.sum(prod, axis=-1, keepdims=True)


def head_conv(patches_bf16, w_vec):
    """patches @ w for a single output channel; returns (M, 1) f32."""
    M, K = patches_bf16.shape
    Kp = _round_up(K, LANE)
    M8 = _round_up(M, SUBLANE)
    tm = min(512, M8)
    Mp = _round_up(M8, tm)

    p = jnp.pad(patches_bf16, ((0, Mp - M), (0, Kp - K)))
    w = jnp.pad(w_vec.astype(jnp.float32), (0, Kp - K)).reshape(1, Kp)

    out = pl.pallas_call(
        _head_kernel,
        out_shape=jax.ShapeDtypeStruct((Mp, 1), jnp.float32),
        grid=(Mp // tm,),
        in_specs=[
            pl.BlockSpec((tm, Kp), lambda i: (i, 0)),
            pl.BlockSpec((1, Kp), lambda i: (0, 0)),
        ],
        out_specs=pl.BlockSpec((tm, 1), lambda i: (i, 0)),
        compiler_params=pltpu.CompilerParams(
            dimension_semantics=("parallel",),
            vmem_limit_bytes=VMEM_LIMIT,
        ),
    )(p, w)
    return out[:M, :]


# ----------------------------------------------------------------------------
# JAX glue: im2col (bf16), weight reshaping, BN folding
# ----------------------------------------------------------------------------
def im2col(x_nhwc, kh, kw, stride, pad):
    """Returns (N*Ho*Wo, kh*kw*C) patches (same dtype as input), (kh, kw, c)-ordered."""
    N, H, W, C = x_nhwc.shape
    xp = jnp.pad(x_nhwc, ((0, 0), (pad, pad), (pad, pad), (0, 0)))
    Ho = (H + 2 * pad - kh) // stride + 1
    Wo = (W + 2 * pad - kw) // stride + 1
    cols = []
    for i in range(kh):
        for j in range(kw):
            cols.append(xp[:, i:i + stride * Ho:stride,
                           j:j + stride * Wo:stride, :])
    patches = jnp.concatenate(cols, axis=-1)              # (N, Ho, Wo, kh*kw*C)
    return patches.reshape(N * Ho * Wo, kh * kw * C), Ho, Wo


def weight_to_mat(w_oihw):
    """PyTorch (Cout, Cin, KH, KW) -> (KH*KW*Cin, Cout), matching im2col order."""
    co, ci, kh, kw = w_oihw.shape
    return jnp.transpose(w_oihw, (2, 3, 1, 0)).reshape(kh * kw * ci, co)


def fold_bn(gamma, beta, rmean, rvar, conv_bias=None):
    """Eval-mode BN (+ conv bias) folded into per-channel scale / shift."""
    scale = gamma / jnp.sqrt(rvar + EPS)
    bias = conv_bias if conv_bias is not None else jnp.zeros_like(rmean)
    shift = beta + scale * (bias - rmean)
    return scale, shift


def conv_layer(x_nhwc_bf16, w_oihw, scale, shift, *, stride, pad, slope):
    N = x_nhwc_bf16.shape[0]
    Cout, Cin, kh, kw = w_oihw.shape
    assert Cin == x_nhwc_bf16.shape[-1]
    patches, Ho, Wo = im2col(x_nhwc_bf16, kh, kw, stride, pad)
    # Fold the per-channel scale into the weight columns in f32, then cast.
    wmat = weight_to_mat(w_oihw).astype(jnp.float32) * scale[None, :]
    y = matmul_bias_act(patches, wmat.astype(jnp.bfloat16), shift, slope=slope)
    return y.reshape(N, Ho, Wo, Cout)


# ----------------------------------------------------------------------------
# DiscriminatorFunieGAN forward (Pallas path) and pure-JAX reference
# ----------------------------------------------------------------------------
def discriminator_funiegan_pallas(img_A, img_B, params):
    x = jnp.concatenate([img_A, img_B], axis=1)              # NCHW concat
    x = jnp.transpose(x, (0, 2, 3, 1)).astype(jnp.bfloat16)  # NHWC, bf16 once

    # Block 1: Conv(2*in_ch -> 32, 4x4, s2, p1) + LeakyReLU(0.2)   (no BN)
    x = conv_layer(x, params["w1"], jnp.ones_like(params["b1"]), params["b1"],
                   stride=2, pad=1, slope=0.2)

    # Blocks 2-4: Conv + BatchNorm(eval) + LeakyReLU(0.2)
    for idx in (2, 3, 4):
        s, b = fold_bn(params[f"bn{idx}_g"], params[f"bn{idx}_b"],
                       params[f"bn{idx}_rm"], params[f"bn{idx}_rv"],
                       params[f"b{idx}"])
        x = conv_layer(x, params[f"w{idx}"], s, b, stride=2, pad=1, slope=0.2)

    # ZeroPad2d((left=1, right=0, top=1, bottom=0))
    x = jnp.pad(x, ((0, 0), (1, 0), (1, 0), (0, 0)))

    # Final Conv(256 -> 1, 4x4, s1, p1, bias=False), no activation:
    # dedicated VPU-reduction head (no 128x Cout padding / inflated writeback).
    N = x.shape[0]
    patches, Ho, Wo = im2col(x, 4, 4, 1, 1)
    w5 = weight_to_mat(params["w5"]).reshape(-1)              # (K,), Cout == 1
    y = head_conv(patches, w5).reshape(N, Ho, Wo, 1)

    return jnp.transpose(y, (0, 3, 1, 2))                     # NHWC -> NCHW


def discriminator_funiegan_reference(img_A, img_B, params):
    """Pure-JAX f32 reference (same eval-mode BN semantics) for validation."""
    x = jnp.concatenate([img_A, img_B], axis=1)
    x = jnp.transpose(x, (0, 2, 3, 1)).astype(jnp.float32)

    def conv(inp, w_oihw, stride, pad, bias=None):
        w = jnp.transpose(w_oihw, (2, 3, 1, 0))  # HWIO
        y = lax.conv_general_dilated(
            inp, w, (stride, stride), [(pad, pad), (pad, pad)],
            dimension_numbers=("NHWC", "HWIO", "NHWC"))
        return y if bias is None else y + bias

    def bn(y, g, b, rm, rv):
        return (y - rm) / jnp.sqrt(rv + EPS) * g + b

    def lrelu(y):
        return jnp.where(y >= 0, y, 0.2 * y)

    y = lrelu(conv(x, params["w1"], 2, 1, params["b1"]))
    for idx in (2, 3, 4):
        y = conv(y, params[f"w{idx}"], 2, 1, params[f"b{idx}"])
        y = lrelu(bn(y, params[f"bn{idx}_g"], params[f"bn{idx}_b"],
                     params[f"bn{idx}_rm"], params[f"bn{idx}_rv"]))
    y = jnp.pad(y, ((0, 0), (1, 0), (1, 0), (0, 0)))
    y = conv(y, params["w5"], 1, 1)
    return jnp.transpose(y, (0, 3, 1, 2))


# ----------------------------------------------------------------------------
def make_params(key, in_channels=3):
    chans = [(in_channels * 2, 32), (32, 64), (64, 128), (128, 256)]
    params = {}
    ks = iter(jax.random.split(key, 32))
    f32 = jnp.float32
    for idx, (ci, co) in enumerate(chans, start=1):
        params[f"w{idx}"] = 0.05 * jax.random.normal(next(ks), (co, ci, 4, 4), f32)
        params[f"b{idx}"] = 0.02 * jax.random.normal(next(ks), (co,), f32)
        if idx >= 2:  # block 1 has no BatchNorm
            params[f"bn{idx}_g"] = 1.0 + 0.1 * jax.random.normal(next(ks), (co,), f32)
            params[f"bn{idx}_b"] = 0.1 * jax.random.normal(next(ks), (co,), f32)
            params[f"bn{idx}_rm"] = 0.1 * jax.random.normal(next(ks), (co,), f32)
            params[f"bn{idx}_rv"] = 1.0 + 0.1 * jax.random.uniform(next(ks), (co,), f32)
    params["w5"] = 0.05 * jax.random.normal(next(ks), (1, 256, 4, 4), f32)
    return params


if __name__ == "__main__":
    key = jax.random.PRNGKey(0)
    k_a, k_b, k_p = jax.random.split(key, 3)

    N, C, H, W = 2, 3, 32, 32  # small shapes; 4 stride-2 blocks -> 2x2 patch map
    img_A = jax.random.normal(k_a, (N, C, H, W), jnp.float32)  # NCHW, like PyTorch
    img_B = jax.random.normal(k_b, (N, C, H, W), jnp.float32)
    params = make_params(k_p, in_channels=C)

    out = jax.block_until_ready(
        jax.jit(discriminator_funiegan_pallas)(img_A, img_B, params))
    ref = jax.block_until_ready(
        jax.jit(discriminator_funiegan_reference)(img_A, img_B, params))

    assert out.shape == (N, 1, H // 16, W // 16), out.shape
    err = float(jnp.max(jnp.abs(out - ref)))
    tol = 2e-2 + 5e-2 * float(jnp.max(jnp.abs(ref)))  # bf16 activations + matmuls
    assert err < tol, f"max abs error {err} exceeds tolerance {tol}"
    print("KERNEL_OK")
</pallas_src>

<mosaic_0001>
module attributes {stable_mosaic.version = 11 : i64} {
  func.func @_matmul_bias_act_kernel(%arg0: i32, %arg1: memref<256x128xbf16, #tpu.memory_space<vmem>>, %arg2: memref<128x128xbf16, #tpu.memory_space<vmem>>, %arg3: memref<1x128xf32, #tpu.memory_space<vmem>>, %arg4: memref<256x128xbf16, #tpu.memory_space<vmem>>) attributes {dimension_semantics = [#tpu.dimension_semantics<parallel>], iteration_bounds = array<i64: 2>, scalar_prefetch = 0 : i64, scratch_operands = 0 : i64, tpu.core_type = #tpu.core_type<tc>, window_params = [{transform_indices = @transform_0, window_bounds = array<i64: 256, 128>}, {pipeline_mode = #tpu.pipeline_mode<synchronous>, transform_indices = @transform_1, window_bounds = array<i64: 128, 128>}, {pipeline_mode = #tpu.pipeline_mode<synchronous>, transform_indices = @transform_2, window_bounds = array<i64: 1, 128>}, {transform_indices = @transform_3, window_bounds = array<i64: 256, 128>}]} {
    %c0 = arith.constant 0 : index
    %c0_0 = arith.constant 0 : index
    %0 = vector.load %arg1[%c0, %c0_0] : memref<256x128xbf16, #tpu.memory_space<vmem>>, vector<256x128xbf16>
    %c0_1 = arith.constant 0 : index
    %c0_2 = arith.constant 0 : index
    %1 = vector.load %arg2[%c0_1, %c0_2] : memref<128x128xbf16, #tpu.memory_space<vmem>>, vector<128x128xbf16>
    %cst = arith.constant dense<0.000000e+00> : vector<256x128xf32>
    %2 = tpu.matmul %0, %1, %cst {dimension_numbers = #tpu.dot_dimension_numbers<[1], [0], [0], [1], [0, 0, 1, 1], [], []>} : vector<256x128xbf16>, vector<128x128xbf16>, vector<256x128xf32> -> vector<256x128xf32>
    %c0_3 = arith.constant 0 : index
    %c0_4 = arith.constant 0 : index
    %3 = vector.load %arg3[%c0_3, %c0_4] : memref<1x128xf32, #tpu.memory_space<vmem>>, vector<1x128xf32>
    %4 = vector.broadcast %3 : vector<1x128xf32> to vector<256x128xf32>
    %5 = arith.addf %2, %4 : vector<256x128xf32>
    %cst_5 = arith.constant 0.000000e+00 : f32
    %6 = vector.broadcast %cst_5 : f32 to vector<256x128xf32>
    %7 = arith.cmpf oge, %5, %6 : vector<256x128xf32>
    %cst_6 = arith.constant 2.000000e-01 : f32
    %8 = vector.broadcast %cst_6 : f32 to vector<256x128xf32>
    %9 = arith.mulf %8, %5 : vector<256x128xf32>
    %10 = arith.select %7, %5, %9 : vector<256x128xi1>, vector<256x128xf32>
    %11 = arith.truncf %10 : vector<256x128xf32> to vector<256x128xbf16>
    %c0_7 = arith.constant 0 : index
    %c0_8 = arith.constant 0 : index
    %12 = vector.load %arg4[%c0_7, %c0_8] : memref<256x128xbf16, #tpu.memory_space<vmem>>, vector<256x128xbf16>
    tpu.vector_store %arg4[%c0_7, %c0_8], %11 {strides = array<i32>} : memref<256x128xbf16, #tpu.memory_space<vmem>>, vector<256x128xbf16>,
    return
  }
  func.func @transform_0(%arg0: i32) -> (i32, i32) {
    %c0_i32 = arith.constant 0 : i32
    %c0_i32_0 = arith.constant 0 : i32
    return %arg0, %c0_i32 : i32, i32
  }
  func.func @transform_1(%arg0: i32) -> (i32, i32) {
    %c0_i32 = arith.constant 0 : i32
    %c0_i32_0 = arith.constant 0 : i32
    %c0_i32_1 = arith.constant 0 : i32
    return %c0_i32, %c0_i32_0 : i32, i32
  }
  func.func @transform_2(%arg0: i32) -> (i32, i32) {
    %c0_i32 = arith.constant 0 : i32
    %c0_i32_0 = arith.constant 0 : i32
    %c0_i32_1 = arith.constant 0 : i32
    return %c0_i32, %c0_i32_0 : i32, i32
  }
  func.func @transform_3(%arg0: i32) -> (i32, i32) {
    %c0_i32 = arith.constant 0 : i32
    %c0_i32_0 = arith.constant 0 : i32
    return %arg0, %c0_i32 : i32, i32
  }
}

module attributes {stable_mosaic.version = 11 : i64} {
  func.func @_matmul_bias_act_kernel(%arg0: i32, %arg1: memref<64x512xbf16, #tpu.memory_space<vmem>>, %arg2: memref<512x128xbf16, #tpu.memory_space<vmem>>, %arg3: memref<1x128xf32, #tpu.memory_space<vmem>>, %arg4: memref<64x128xbf16, #tpu.memory_space<vmem>>) attributes {dimension_semantics = [#tpu.dimension_semantics<parallel>], iteration_bounds = array<i64: 2>, scalar_prefetch = 0 : i64, scratch_operands = 0 : i64, tpu.core_type = #tpu.core_type<tc>, window_params = [{transform_indices = @transform_0, window_bounds = array<i64: 64, 512>}, {pipeline_mode = #tpu.pipeline_mode<synchronous>, transform_indices = @transform_1, window_bounds = array<i64: 512, 128>}, {pipeline_mode = #tpu.pipeline_mode<synchronous>, transform_indices = @transform_2, window_bounds = array<i64: 1, 128>}, {transform_indices = @transform_3, window_bounds = array<i64: 64, 128>}]} {
    %c0 = arith.constant 0 : index
    %c0_0 = arith.constant 0 : index
    %0 = vector.load %arg1[%c0, %c0_0] : memref<64x512xbf16, #tpu.memory_space<vmem>>, vector<64x512xbf16>
    %c0_1 = arith.constant 0 : index
    %c0_2 = arith.constant 0 : index
    %1 = vector.load %arg2[%c0_1, %c0_2] : memref<512x128xbf16, #tpu.memory_space<vmem>>, vector<512x128xbf16>
    %cst = arith.constant dense<0.000000e+00> : vector<64x128xf32>
    %2 = tpu.matmul %0, %1, %cst {dimension_numbers = #tpu.dot_dimension_numbers<[1], [0], [0], [1], [0, 0, 1, 1], [], []>} : vector<64x512xbf16>, vector<512x128xbf16>, vector<64x128xf32> -> vector<64x128xf32>
    %c0_3 = arith.constant 0 : index
    %c0_4 = arith.constant 0 : index
    %3 = vector.load %arg3[%c0_3, %c0_4] : memref<1x128xf32, #tpu.memory_space<vmem>>, vector<1x128xf32>
    %4 = vector.broadcast %3 : vector<1x128xf32> to vector<64x128xf32>
    %5 = arith.addf %2, %4 : vector<64x128xf32>
    %cst_5 = arith.constant 0.000000e+00 : f32
    %6 = vector.broadcast %cst_5 : f32 to vector<64x128xf32>
    %7 = arith.cmpf oge, %5, %6 : vector<64x128xf32>
    %cst_6 = arith.constant 2.000000e-01 : f32
    %8 = vector.broadcast %cst_6 : f32 to vector<64x128xf32>
    %9 = arith.mulf %8, %5 : vector<64x128xf32>
    %10 = arith.select %7, %5, %9 : vector<64x128xi1>, vector<64x128xf32>
    %11 = arith.truncf %10 : vector<64x128xf32> to vector<64x128xbf16>
    %c0_7 = arith.constant 0 : index
    %c0_8 = arith.constant 0 : index
    %12 = vector.load %arg4[%c0_7, %c0_8] : memref<64x128xbf16, #tpu.memory_space<vmem>>, vector<64x128xbf16>
    tpu.vector_store %arg4[%c0_7, %c0_8], %11 {strides = array<i32>} : memref<64x128xbf16, #tpu.memory_space<vmem>>, vector<64x128xbf16>,
    return
  }
  func.func @transform_0(%arg0: i32) -> (i32, i32) {
    %c0_i32 = arith.constant 0 : i32
    %c0_i32_0 = arith.constant 0 : i32
    return %arg0, %c0_i32 : i32, i32
  }
  func.func @transform_1(%arg0: i32) -> (i32, i32) {
    %c0_i32 = arith.constant 0 : i32
    %c0_i32_0 = arith.constant 0 : i32
    %c0_i32_1 = arith.constant 0 : i32
    return %c0_i32, %c0_i32_0 : i32, i32
  }
  func.func @transform_2(%arg0: i32) -> (i32, i32) {
    %c0_i32 = arith.constant 0 : i32
    %c0_i32_0 = arith.constant 0 : i32
    %c0_i32_1 = arith.constant 0 : i32
    return %c0_i32, %c0_i32_0 : i32, i32
  }
  func.func @transform_3(%arg0: i32) -> (i32, i32) {
    %c0_i32 = arith.constant 0 : i32
    %c0_i32_0 = arith.constant 0 : i32
    return %arg0, %c0_i32 : i32, i32
  }
}

module attributes {stable_mosaic.version = 11 : i64} {
  func.func @_matmul_bias_act_kernel(%arg0: i32, %arg1: memref<16x1024xbf16, #tpu.memory_space<vmem>>, %arg2: memref<1024x128xbf16, #tpu.memory_space<vmem>>, %arg3: memref<1x128xf32, #tpu.memory_space<vmem>>, %arg4: memref<16x128xbf16, #tpu.memory_space<vmem>>) attributes {dimension_semantics = [#tpu.dimension_semantics<parallel>], iteration_bounds = array<i64: 2>, scalar_prefetch = 0 : i64, scratch_operands = 0 : i64, tpu.core_type = #tpu.core_type<tc>, window_params = [{transform_indices = @transform_0, window_bounds = array<i64: 16, 1024>}, {pipeline_mode = #tpu.pipeline_mode<synchronous>, transform_indices = @transform_1, window_bounds = array<i64: 1024, 128>}, {pipeline_mode = #tpu.pipeline_mode<synchronous>, transform_indices = @transform_2, window_bounds = array<i64: 1, 128>}, {transform_indices = @transform_3, window_bounds = array<i64: 16, 128>}]} {
    %c0 = arith.constant 0 : index
    %c0_0 = arith.constant 0 : index
    %0 = vector.load %arg1[%c0, %c0_0] : memref<16x1024xbf16, #tpu.memory_space<vmem>>, vector<16x1024xbf16>
    %c0_1 = arith.constant 0 : index
    %c0_2 = arith.constant 0 : index
    %1 = vector.load %arg2[%c0_1, %c0_2] : memref<1024x128xbf16, #tpu.memory_space<vmem>>, vector<1024x128xbf16>
    %cst = arith.constant dense<0.000000e+00> : vector<16x128xf32>
    %2 = tpu.matmul %0, %1, %cst {dimension_numbers = #tpu.dot_dimension_numbers<[1], [0], [0], [1], [0, 0, 1, 1], [], []>} : vector<16x1024xbf16>, vector<1024x128xbf16>, vector<16x128xf32> -> vector<16x128xf32>
    %c0_3 = arith.constant 0 : index
    %c0_4 = arith.constant 0 : index
    %3 = vector.load %arg3[%c0_3, %c0_4] : memref<1x128xf32, #tpu.memory_space<vmem>>, vector<1x128xf32>
    %4 = vector.broadcast %3 : vector<1x128xf32> to vector<16x128xf32>
    %5 = arith.addf %2, %4 : vector<16x128xf32>
    %cst_5 = arith.constant 0.000000e+00 : f32
    %6 = vector.broadcast %cst_5 : f32 to vector<16x128xf32>
    %7 = arith.cmpf oge, %5, %6 : vector<16x128xf32>
    %cst_6 = arith.constant 2.000000e-01 : f32
    %8 = vector.broadcast %cst_6 : f32 to vector<16x128xf32>
    %9 = arith.mulf %8, %5 : vector<16x128xf32>
    %10 = arith.select %7, %5, %9 : vector<16x128xi1>, vector<16x128xf32>
    %11 = arith.truncf %10 : vector<16x128xf32> to vector<16x128xbf16>
    %c0_7 = arith.constant 0 : index
    %c0_8 = arith.constant 0 : index
    %12 = vector.load %arg4[%c0_7, %c0_8] : memref<16x128xbf16, #tpu.memory_space<vmem>>, vector<16x128xbf16>
    tpu.vector_store %arg4[%c0_7, %c0_8], %11 {strides = array<i32>} : memref<16x128xbf16, #tpu.memory_space<vmem>>, vector<16x128xbf16>,
    return
  }
  func.func @transform_0(%arg0: i32) -> (i32, i32) {
    %c0_i32 = arith.constant 0 : i32
    %c0_i32_0 = arith.constant 0 : i32
    return %arg0, %c0_i32 : i32, i32
  }
  func.func @transform_1(%arg0: i32) -> (i32, i32) {
    %c0_i32 = arith.constant 0 : i32
    %c0_i32_0 = arith.constant 0 : i32
    %c0_i32_1 = arith.constant 0 : i32
    return %c0_i32, %c0_i32_0 : i32, i32
  }
  func.func @transform_2(%arg0: i32) -> (i32, i32) {
    %c0_i32 = arith.constant 0 : i32
    %c0_i32_0 = arith.constant 0 : i32
    %c0_i32_1 = arith.constant 0 : i32
    return %c0_i32, %c0_i32_0 : i32, i32
  }
  func.func @transform_3(%arg0: i32) -> (i32, i32) {
    %c0_i32 = arith.constant 0 : i32
    %c0_i32_0 = arith.constant 0 : i32
    return %arg0, %c0_i32 : i32, i32
  }
}

module attributes {stable_mosaic.version = 11 : i64} {
  func.func @_matmul_bias_act_kernel(%arg0: i32, %arg1: memref<8x2048xbf16, #tpu.memory_space<vmem>>, %arg2: memref<2048x256xbf16, #tpu.memory_space<vmem>>, %arg3: memref<1x256xf32, #tpu.memory_space<vmem>>, %arg4: memref<8x256xbf16, #tpu.memory_space<vmem>>) attributes {dimension_semantics = [#tpu.dimension_semantics<parallel>], iteration_bounds = array<i64: 1>, scalar_prefetch = 0 : i64, scratch_operands = 0 : i64, tpu.core_type = #tpu.core_type<tc>, window_params = [{transform_indices = @transform_0, window_bounds = array<i64: 8, 2048>}, {pipeline_mode = #tpu.pipeline_mode<synchronous>, transform_indices = @transform_1, window_bounds = array<i64: 2048, 256>}, {pipeline_mode = #tpu.pipeline_mode<synchronous>, transform_indices = @transform_2, window_bounds = array<i64: 1, 256>}, {transform_indices = @transform_3, window_bounds = array<i64: 8, 256>}]} {
    %c0 = arith.constant 0 : index
    %c0_0 = arith.constant 0 : index
    %0 = vector.load %arg1[%c0, %c0_0] : memref<8x2048xbf16, #tpu.memory_space<vmem>>, vector<8x2048xbf16>
    %c0_1 = arith.constant 0 : index
    %c0_2 = arith.constant 0 : index
    %1 = vector.load %arg2[%c0_1, %c0_2] : memref<2048x256xbf16, #tpu.memory_space<vmem>>, vector<2048x256xbf16>
    %cst = arith.constant dense<0.000000e+00> : vector<8x256xf32>
    %2 = tpu.matmul %0, %1, %cst {dimension_numbers = #tpu.dot_dimension_numbers<[1], [0], [0], [1], [0, 0, 1, 1], [], []>} : vector<8x2048xbf16>, vector<2048x256xbf16>, vector<8x256xf32> -> vector<8x256xf32>
    %c0_3 = arith.constant 0 : index
    %c0_4 = arith.constant 0 : index
    %3 = vector.load %arg3[%c0_3, %c0_4] : memref<1x256xf32, #tpu.memory_space<vmem>>, vector<1x256xf32>
    %4 = vector.broadcast %3 : vector<1x256xf32> to vector<8x256xf32>
    %5 = arith.addf %2, %4 : vector<8x256xf32>
    %cst_5 = arith.constant 0.000000e+00 : f32
    %6 = vector.broadcast %cst_5 : f32 to vector<8x256xf32>
    %7 = arith.cmpf oge, %5, %6 : vector<8x256xf32>
    %cst_6 = arith.constant 2.000000e-01 : f32
    %8 = vector.broadcast %cst_6 : f32 to vector<8x256xf32>
    %9 = arith.mulf %8, %5 : vector<8x256xf32>
    %10 = arith.select %7, %5, %9 : vector<8x256xi1>, vector<8x256xf32>
    %11 = arith.truncf %10 : vector<8x256xf32> to vector<8x256xbf16>
    %c0_7 = arith.constant 0 : index
    %c0_8 = arith.constant 0 : index
    %12 = vector.load %arg4[%c0_7, %c0_8] : memref<8x256xbf16, #tpu.memory_space<vmem>>, vector<8x256xbf16>
    tpu.vector_store %arg4[%c0_7, %c0_8], %11 {strides = array<i32>} : memref<8x256xbf16, #tpu.memory_space<vmem>>, vector<8x256xbf16>,
    return
  }
  func.func @transform_0(%arg0: i32) -> (i32, i32) {
    %c0_i32 = arith.constant 0 : i32
    %c0_i32_0 = arith.constant 0 : i32
    return %arg0, %c0_i32 : i32, i32
  }
  func.func @transform_1(%arg0: i32) -> (i32, i32) {
    %c0_i32 = arith.constant 0 : i32
    %c0_i32_0 = arith.constant 0 : i32
    %c0_i32_1 = arith.constant 0 : i32
    return %c0_i32, %c0_i32_0 : i32, i32
  }
  func.func @transform_2(%arg0: i32) -> (i32, i32) {
    %c0_i32 = arith.constant 0 : i32
    %c0_i32_0 = arith.constant 0 : i32
    %c0_i32_1 = arith.constant 0 : i32
    return %c0_i32, %c0_i32_0 : i32, i32
  }
  func.func @transform_3(%arg0: i32) -> (i32, i32) {
    %c0_i32 = arith.constant 0 : i32
    %c0_i32_0 = arith.constant 0 : i32
    return %arg0, %c0_i32 : i32, i32
  }
}

module attributes {stable_mosaic.version = 11 : i64} {
  func.func @_head_kernel(%arg0: i32, %arg1: memref<8x4096xbf16, #tpu.memory_space<vmem>>, %arg2: memref<1x4096xf32, #tpu.memory_space<vmem>>, %arg3: memref<8x1xf32, #tpu.memory_space<vmem>>) attributes {dimension_semantics = [#tpu.dimension_semantics<parallel>], iteration_bounds = array<i64: 1>, scalar_prefetch = 0 : i64, scratch_operands = 0 : i64, tpu.core_type = #tpu.core_type<tc>, window_params = [{transform_indices = @transform_0, window_bounds = array<i64: 8, 4096>}, {pipeline_mode = #tpu.pipeline_mode<synchronous>, transform_indices = @transform_1, window_bounds = array<i64: 1, 4096>}, {transform_indices = @transform_2, window_bounds = array<i64: 8, 1>}]} {
    %c0 = arith.constant 0 : index
    %c0_0 = arith.constant 0 : index
    %0 = vector.load %arg1[%c0, %c0_0] : memref<8x4096xbf16, #tpu.memory_space<vmem>>, vector<8x4096xbf16>
    %1 = arith.extf %0 : vector<8x4096xbf16> to vector<8x4096xf32>
    %c0_1 = arith.constant 0 : index
    %c0_2 = arith.constant 0 : index
    %2 = vector.load %arg2[%c0_1, %c0_2] : memref<1x4096xf32, #tpu.memory_space<vmem>>, vector<1x4096xf32>
    %3 = vector.broadcast %2 : vector<1x4096xf32> to vector<8x4096xf32>
    %4 = arith.mulf %1, %3 : vector<8x4096xf32>
    %cst = arith.constant dense<0.000000e+00> : vector<8xf32>
    %5 = vector.multi_reduction <add>, %4, %cst [1] : vector<8x4096xf32> to vector<8xf32>
    %6 = vector.shape_cast %5 : vector<8xf32> to vector<8x1xf32>
    %c0_3 = arith.constant 0 : index
    %c0_4 = arith.constant 0 : index
    %7 = vector.load %arg3[%c0_3, %c0_4] : memref<8x1xf32, #tpu.memory_space<vmem>>, vector<8x1xf32>
    tpu.vector_store %arg3[%c0_3, %c0_4], %6 {strides = array<i32>} : memref<8x1xf32, #tpu.memory_space<vmem>>, vector<8x1xf32>,
    return
  }
  func.func @transform_0(%arg0: i32) -> (i32, i32) {
    %c0_i32 = arith.constant 0 : i32
    %c0_i32_0 = arith.constant 0 : i32
    return %arg0, %c0_i32 : i32, i32
  }
  func.func @transform_1(%arg0: i32) -> (i32, i32) {
    %c0_i32 = arith.constant 0 : i32
    %c0_i32_0 = arith.constant 0 : i32
    %c0_i32_1 = arith.constant 0 : i32
    return %c0_i32, %c0_i32_0 : i32, i32
  }
  func.func @transform_2(%arg0: i32) -> (i32, i32) {
    %c0_i32 = arith.constant 0 : i32
    %c0_i32_0 = arith.constant 0 : i32
    return %arg0, %c0_i32 : i32, i32
  }
}

</mosaic_0001>

<bundles_post_ra>
// kernel: discriminator_funiegan_pallas.5
= control target key start
LH: loop header
LB: loop body
LE: loop exit
PB: predicated region body
PF: predicated region fallthrough
CT: control target
= control target key end

     0   :  { %s1190_s12 = smov 0   ;;  %s1317_s0 = inlined_call_operand.vmem [shape: bf16[512,128], index: 0, kind: input, shape index: {}]   ;;  %s1318_s1 = inlined_call_operand.vmem [shape: bf16[128,128], index: 1, kind: input, shape index: {}]   ;;  %s1319_s2 = inlined_call_operand.vmem [shape: f32[1,128], index: 2, kind: input, shape index: {}]   ;;  %s1320_s3 = inlined_call_operand.vmem [shape: bf16[512,128], index: 3, kind: output, shape index: {}]  }
   0x1 LB: > { %s847_s13 = sadd.s32 4294967295, %s1168_s12   ;;  %p851_p0 = scmp.ge.s32.totalorder %s1168_s12, 1  ;;  %s1168_s12 = sphi %s1190_s12, %s13_s12  }
   0x2   : > { %p138_p1 = scmp.lt.s32.totalorder %s1168_s12, 3 }
   0x4   : > { %p139_p2 = pnand %p851_p0, %p138_p1 }
   0x5   : > { %v1138_v0 = vld [vmem:[%s1318_s1] sm:$0xff] (!%p139_p2)   ;;  %s852_s16 = sshll.u32 (!%p139_p2), %s847_s13, 5  ;;  %v1139_v1 = vld [vmem:[%s1318_s1 + $0x8] sm:$0xff] (!%p139_p2)   ;;  %v1140_v2 = vld [vmem:[%s1318_s1 + $0x10] sm:$0xff] (!%p139_p2)  }
   0x6   : > { %142 = sbr.rel (%p139_p2) target bundleno = 293 (0x125), region = 32  ;;  %p163_p3 = scmp.lt.s32.totalorder (!%p139_p2), %s852_s16, 63  ;;  %1066 = vmatprep.subr.bf16.mxu0 (!%p139_p2), %v1138_v0  ;;  %1114 = vmatprep.subr.bf16.mxu1 (!%p139_p2), %v1138_v0  ;;  %v1141_v3 = vld [vmem:[%s1318_s1 + $0x18] sm:$0xff] (!%p139_p2)   ;;  %v1142_v6 = vld [vmem:[%s1318_s1 + $0x20] sm:$0xff] (!%p139_p2)   ;;  %v1143_v7 = vld [vmem:[%s1318_s1 + $0x28] sm:$0xff] (!%p139_p2)  }
   0x7   : > { %1067 = vmatpush3.bf16.msra.mxu0 (!%p139_p2), %v1138_v0  ;;  %1122 = vmatpush3.bf16.msra.mxu1 (!%p139_p2), %v1138_v0  ;;  %v1144_v8 = vld [vmem:[%s1318_s1 + $0x30] sm:$0xff] (!%p139_p2)   ;;  %v1145_v9 = vld [vmem:[%s1318_s1 + $0x38] sm:$0xff] (!%p139_p2)   ;;  %v1251_v24 = vld [vmem:[%s1319_s2] ss:$0 sm:$0xff] (!%p139_p2) }
   0x8   : > { %1068 = vmatprep.subr.bf16.mxu0 (!%p139_p2), %v1139_v1  ;;  %1115 = vmatprep.subr.bf16.mxu1 (!%p139_p2), %v1139_v1 }
   0xb   : > { %1069 = vmatpush3.bf16.msra.mxu0 (!%p139_p2), %v1139_v1  ;;  %1123 = vmatpush3.bf16.msra.mxu1 (!%p139_p2), %v1139_v1 }
   0xc   : > { %1070 = vmatprep.subr.bf16.mxu0 (!%p139_p2), %v1140_v2  ;;  %1116 = vmatprep.subr.bf16.mxu1 (!%p139_p2), %v1140_v2 }
   0xd   : > { %s1322_s16 = smov (!%p163_p3, %s852_s16), 63 }
   0xe   : > { %s853_s21 = sshll.u32 %s1322_s16, 2 }
   0xf   : > { %s1215_s24 = scalar_lea.vmem %s1317_s0, %s853_s21  ;;  %1071 = vmatpush3.bf16.msra.mxu0 %v1140_v2  ;;  %1124 = vmatpush3.bf16.msra.mxu1 %v1140_v2  ;;  %s1268_s13 = scalar_lea.vmem %s1320_s3, %s853_s21 }
  0x10   : > { %v1146_v4 = vld [vmem:[%s1215_s24] sm:$0xff]   ;;  %1072 = vmatprep.subr.bf16.mxu0 %v1141_v3  ;;  %1117 = vmatprep.subr.bf16.mxu1 %v1141_v3  ;;  %v1148_v10 = vld [vmem:[%s1215_s24 + $0x8] sm:$0xff]   ;;  %v1150_v12 = vld [vmem:[%s1215_s24 + $0x10] sm:$0xff]  }
  0x11   : > { %v1147_v5 = vld [vmem:[%s1215_s24 + $0x40] sm:$0xff]   ;;  %1082 = vmatprep.mubr.bf16.mxu0 %v1146_v4  ;;  %v1149_v11 = vld [vmem:[%s1215_s24 + $0x48] sm:$0xff]   ;;  %v1151_v13 = vld [vmem:[%s1215_s24 + $0x50] sm:$0xff]  }
  0x12   : > { %1098 = vmatprep.mubr.bf16.mxu1 %v1147_v5  ;;  %v1152_v14 = vld [vmem:[%s1215_s24 + $0x18] sm:$0xff]   ;;  %v1154_v16 = vld [vmem:[%s1215_s24 + $0x20] sm:$0xff]   ;;  %v1156_v18 = vld [vmem:[%s1215_s24 + $0x28] sm:$0xff]  }
  0x13   : > { %1073 = vmatpush3.bf16.msra.mxu0 %v1141_v3  ;;  %1125 = vmatpush3.bf16.msra.mxu1 %v1141_v3  ;;  %v1153_v15 = vld [vmem:[%s1215_s24 + $0x58] sm:$0xff]   ;;  %v1155_v17 = vld [vmem:[%s1215_s24 + $0x60] sm:$0xff]   ;;  %v1157_v19 = vld [vmem:[%s1215_s24 + $0x68] sm:$0xff]  }
  0x14   : > { %1074 = vmatprep.subr.bf16.mxu0 %v1142_v6  ;;  %1118 = vmatprep.subr.bf16.mxu1 %v1142_v6  ;;  %v1158_v20 = vld [vmem:[%s1215_s24 + $0x30] sm:$0xff]   ;;  %v1160_v22 = vld [vmem:[%s1215_s24 + $0x38] sm:$0xff]  }
  0x15   : > { %v1159_v21 = vld [vmem:[%s1215_s24 + $0x70] sm:$0xff]   ;;  %v1161_v23 = vld [vmem:[%s1215_s24 + $0x78] sm:$0xff]  }
  0x17   : > { %1075 = vmatpush3.bf16.msra.mxu0 %v1142_v6  ;;  %1126 = vmatpush3.bf16.msra.mxu1 %v1142_v6 }
  0x18   : > { %1076 = vmatprep.subr.bf16.mxu0 %v1143_v7  ;;  %1119 = vmatprep.subr.bf16.mxu1 %v1143_v7 }
  0x1b   : > { %1077 = vmatpush3.bf16.msra.mxu0 %v1143_v7  ;;  %1127 = vmatpush3.bf16.msra.mxu1 %v1143_v7 }
  0x1c   : > { %1078 = vmatprep.subr.bf16.mxu0 %v1144_v8  ;;  %1120 = vmatprep.subr.bf16.mxu1 %v1144_v8 }
  0x1f   : > { %1079 = vmatpush3.bf16.msra.mxu0 %v1144_v8  ;;  %1128 = vmatpush3.bf16.msra.mxu1 %v1144_v8 }
  0x20   : > { %1080 = vmatprep.subr.bf16.mxu0 %v1145_v9  ;;  %1121 = vmatprep.subr.bf16.mxu1 %v1145_v9 }
  0x23   : > { %1081 = vmatpush3.bf16.msra.mxu0 %v1145_v9  ;;  %1129 = vmatpush3.bf16.msra.mxu1 %v1145_v9 }
  0x26   : > { %1083 = vmatmul.mubr.bf16.vlgmr.msra.gmra.mrb[0].mxu0 %v1148_v10  ;;  %1099 = vmatmul.mubr.bf16.vlgmr.msra.gmra.mrb[0].mxu1 %v1149_v11 }
  0x27   : > { %1086 = vmatprep.mubr.bf16.mxu0 %v1150_v12  ;;  %1102 = vmatprep.mubr.bf16.mxu1 %v1151_v13 }
  0x2e   : > { %1087 = vmatmul.mubr.bf16.gmra.mrb[4].mxu0 %v1152_v14  ;;  %1103 = vmatmul.mubr.bf16.gmra.mrb[4].mxu1 %v1153_v15 }
  0x2f   : > { %1090 = vmatprep.mubr.bf16.mxu0 %v1154_v16  ;;  %1106 = vmatprep.mubr.bf16.mxu1 %v1155_v17 }
  0x36   : > { %1091 = vmatmul.mubr.bf16.gmra.mrb[8].mxu0 %v1156_v18  ;;  %1107 = vmatmul.mubr.bf16.gmra.mrb[8].mxu1 %v1157_v19 }
  0x37   : > { %1094 = vmatprep.mubr.bf16.mxu0 %v1158_v20  ;;  %1110 = vmatprep.mubr.bf16.mxu1 %v1159_v21 }
  0x3e   : > { %1095 = vmatmul.mubr.bf16.gmra.mrb[12].mxu0 %v1160_v22  ;;  %1111 = vmatmul.mubr.bf16.gmra.mrb[12].mxu1 %v1161_v23 }
  0xf9   : > { %v1084_v25 = vpop.f32.mrb[0].mxu0  ;;  %v1100_v26 = vpop.f32.mrb[0].mxu1 }
  0xfa   : > { %v417_v27 = vadd.f32 %v1084_v25, %v1251_v24  ;;  %v481_v28 = vadd.f32 %v1100_v26, %v1251_v24  ;;  %v408_v29 = vpop.f32.mrb[1].mxu0  ;;  %v472_v30 = vpop.f32.mrb[1].mxu1 }
  0xfb   : > { %v409_v31 = vadd.f32 %v1251_v24, %v408_v29  ;;  %v473_v32 = vadd.f32 %v1251_v24, %v472_v30  ;;  %v1085_v33 = vpop.f32.mrb[2].mxu0  ;;  %v1101_v34 = vpop.f32.mrb[2].mxu1 }
  0xfc   : > { %vm537_vm0 = vcmp.ge.f32.partialorder %v417_v27, 0.0  ;;  %v569_v35 = vmul.f32 0.2, %v417_v27  ;;  %vm553_vm1 = vcmp.ge.f32.partialorder %v481_v28, 0.0  ;;  %v585_v36 = vmul.f32 0.2, %v481_v28 }
  0xfd   : > { %vm535_vm2 = vcmp.ge.f32.partialorder %v409_v31, 0.0  ;;  %v567_v37 = vmul.f32 0.2, %v409_v31  ;;  %vm551_vm3 = vcmp.ge.f32.partialorder %v473_v32, 0.0  ;;  %v583_v38 = vmul.f32 0.2, %v473_v32 }
  0xfe   : > { %v420_v39 = vadd.f32 %v1085_v33, %v1251_v24  ;;  %v484_v40 = vadd.f32 %v1101_v34, %v1251_v24  ;;  %v411_v41 = vpop.f32.mrb[3].mxu0  ;;  %v475_v42 = vpop.f32.mrb[3].mxu1  ;;  %v601_v43 = vsel %vm537_vm0, %v417_v27, %v569_v35  ;;  %v617_v44 = vsel %vm553_vm1, %v481_v28, %v585_v36 }
  0xff   : > { %v412_v45 = vadd.f32 %v1251_v24, %v411_v41  ;;  %v476_v46 = vadd.f32 %v1251_v24, %v475_v42  ;;  %v599_v51 = vsel %vm535_vm2, %v409_v31, %v567_v37  ;;  %v615_v52 = vsel %vm551_vm3, %v473_v32, %v583_v38 }
 0x100   : > { %vm538_vm4 = vcmp.ge.f32.partialorder %v420_v39, 0.0  ;;  %v570_v47 = vmul.f32 0.2, %v420_v39  ;;  %vm554_vm5 = vcmp.ge.f32.partialorder %v484_v40, 0.0  ;;  %v586_v48 = vmul.f32 0.2, %v484_v40 }
 0x101   : > { %vm536_vm6 = vcmp.ge.f32.partialorder %v412_v45, 0.0  ;;  %v568_v49 = vmul.f32 0.2, %v412_v45  ;;  %vm552_vm7 = vcmp.ge.f32.partialorder %v476_v46, 0.0  ;;  %v584_v50 = vmul.f32 0.2, %v476_v46 }
 0x102   : > { %v602_v53 = vsel %vm538_vm4, %v420_v39, %v570_v47  ;;  %v618_v54 = vsel %vm554_vm5, %v484_v40, %v586_v48  ;;  %v1088_v55 = vpop.f32.mrb[4].mxu0  ;;  %v1104_v56 = vpop.f32.mrb[4].mxu1 }
 0x103   : > { %v955_v57 = vpack.c.bf16 %v602_v53, %v601_v43  ;;  %v995_v58 = vpack.c.bf16 %v618_v54, %v617_v44  ;;  %v600_v59 = vsel %vm536_vm6, %v412_v45, %v568_v49  ;;  %v616_v60 = vsel %vm552_vm7, %v476_v46, %v584_v50  ;;  %v424_v61 = vpop.f32.mrb[5].mxu0  ;;  %v488_v62 = vpop.f32.mrb[5].mxu1 }
 0x104   : > { %v950_v63 = vpack.c.bf16 %v600_v59, %v599_v51  ;;  %v990_v0 = vpack.c.bf16 %v616_v60, %v615_v52  ;;  %v433_v1 = vadd.f32 %v1088_v55, %v1251_v24  ;;  %v497_v2 = vadd.f32 %v1104_v56, %v1251_v24  ;;  %v1089_v3 = vpop.f32.mrb[6].mxu0  ;;  %v1105_v4 = vpop.f32.mrb[6].mxu1 }
 0x105   : > { %1027 = vst [vmem:[%s1268_s13 + $0x8] sm:$0xff] %v955_v57   ;;  %1035 = vst [vmem:[%s1268_s13 + $0x48] sm:$0xff] %v995_v58   ;;  %v425_v5 = vadd.f32 %v1251_v24, %v424_v61  ;;  %v489_v6 = vadd.f32 %v1251_v24, %v488_v62  ;;  %v436_v7 = vadd.f32 %v1089_v3, %v1251_v24  ;;  %v427_v9 = vpop.f32.mrb[7].mxu0  ;;  %v491_v10 = vpop.f32.mrb[7].mxu1 }
 0x106   : > { %v500_v8 = vadd.f32 %v1105_v4, %v1251_v24  ;;  %951 = vst [vmem:[%s1268_s13] sm:$0xff] %v950_v63   ;;  %1034 = vst [vmem:[%s1268_s13 + $0x40] sm:$0xff] %v990_v0   ;;  %vm541_vm8 = vcmp.ge.f32.partialorder %v433_v1, 0.0  ;;  %v573_v11 = vmul.f32 0.2, %v433_v1  ;;  %vm557_vm9 = vcmp.ge.f32.partialorder %v497_v2, 0.0 }
 0x107   : > { %v589_v12 = vmul.f32 0.2, %v497_v2  ;;  %vm539_vm10 = vcmp.ge.f32.partialorder %v425_v5, 0.0  ;;  %v571_v13 = vmul.f32 0.2, %v425_v5  ;;  %vm555_vm11 = vcmp.ge.f32.partialorder %v489_v6, 0.0 }
 0x108   : > { %v605_v14 = vsel %vm541_vm8, %v433_v1, %v573_v11  ;;  %v587_v15 = vmul.f32 0.2, %v489_v6  ;;  %vm542_vm12 = vcmp.ge.f32.partialorder %v436_v7, 0.0  ;;  %v574_v16 = vmul.f32 0.2, %v436_v7 }
 0x109   : > { %v621_v17 = vsel %vm557_vm9, %v497_v2, %v589_v12  ;;  %v603_v18 = vsel %vm539_vm10, %v425_v5, %v571_v13  ;;  %vm558_vm13 = vcmp.ge.f32.partialorder %v500_v8, 0.0  ;;  %v590_v19 = vmul.f32 0.2, %v500_v8  ;;  %v1092_v20 = vpop.f32.mrb[8].mxu0  ;;  %v1108_v21 = vpop.f32.mrb[8].mxu1 }
 0x10a   : > { %v606_v22 = vsel %vm542_vm12, %v436_v7, %v574_v16  ;;  %v428_v23 = vadd.f32 %v1251_v24, %v427_v9  ;;  %v492_v25 = vadd.f32 %v1251_v24, %v491_v10  ;;  %v449_v26 = vadd.f32 %v1092_v20, %v1251_v24  ;;  %v440_v27 = vpop.f32.mrb[9].mxu0  ;;  %v504_v28 = vpop.f32.mrb[9].mxu1 }
 0x10b   : > { %v965_v29 = vpack.c.bf16 %v606_v22, %v605_v14  ;;  %v622_v30 = vsel %vm558_vm13, %v500_v8, %v590_v19  ;;  %v513_v31 = vadd.f32 %v1108_v21, %v1251_v24  ;;  %v441_v32 = vadd.f32 %v1251_v24, %v440_v27  ;;  %v1093_v33 = vpop.f32.mrb[10].mxu0  ;;  %v1109_v34 = vpop.f32.mrb[10].mxu1 }
 0x10c   : > { %v1005_v35 = vpack.c.bf16 %v622_v30, %v621_v17  ;;  %vm540_vm14 = vcmp.ge.f32.partialorder %v428_v23, 0.0  ;;  %v572_v36 = vmul.f32 0.2, %v428_v23  ;;  %vm556_vm15 = vcmp.ge.f32.partialorder %v492_v25, 0.0  ;;  %v443_v37 = vpop.f32.mrb[11].mxu0  ;;  %v507_v38 = vpop.f32.mrb[11].mxu1 }
 0x10d   : > { %1029 = vst [vmem:[%s1268_s13 + $0x18] sm:$0xff] %v965_v29   ;;  %v588_v39 = vmul.f32 0.2, %v492_v25  ;;  %vm545_vm0 = vcmp.ge.f32.partialorder %v449_v26, 0.0  ;;  %v577_v40 = vmul.f32 0.2, %v449_v26  ;;  %v619_v41 = vsel %vm555_vm11, %v489_v6, %v587_v15 }
 0x10e   : > { %vm561_vm1 = vcmp.ge.f32.partialorder %v513_v31, 0.0  ;;  %1037 = vst [vmem:[%s1268_s13 + $0x58] sm:$0xff] %v1005_v35   ;;  %v604_v42 = vsel %vm540_vm14, %v428_v23, %v572_v36  ;;  %v593_v43 = vmul.f32 0.2, %v513_v31  ;;  %vm543_vm2 = vcmp.ge.f32.partialorder %v441_v32, 0.0 }
 0x10f   : > { %v960_v44 = vpack.c.bf16 %v604_v42, %v603_v18  ;;  %v620_v45 = vsel %vm556_vm15, %v492_v25, %v588_v39  ;;  %v575_v46 = vmul.f32 0.2, %v441_v32  ;;  %v505_v47 = vadd.f32 %v1251_v24, %v504_v28 }
 0x110   : > { %v1000_v48 = vpack.c.bf16 %v620_v45, %v619_v41  ;;  %v609_v49 = vsel %vm545_vm0, %v449_v26, %v577_v40  ;;  %v625_v50 = vsel %vm561_vm1, %v513_v31, %v593_v43  ;;  %v452_v51 = vadd.f32 %v1093_v33, %v1251_v24 }
 0x111   : > { %1028 = vst [vmem:[%s1268_s13 + $0x10] sm:$0xff] %v960_v44   ;;  %vm559_vm3 = vcmp.ge.f32.partialorder %v505_v47, 0.0  ;;  %v591_v52 = vmul.f32 0.2, %v505_v47  ;;  %v516_v53 = vadd.f32 %v1109_v34, %v1251_v24  ;;  %v444_v54 = vadd.f32 %v1251_v24, %v443_v37  ;;  %v1096_v55 = vpop.f32.mrb[12].mxu0  ;;  %v1112_v56 = vpop.f32.mrb[12].mxu1 }
 0x112   : > { %1036 = vst [vmem:[%s1268_s13 + $0x50] sm:$0xff] %v1000_v48   ;;  %vm546_vm4 = vcmp.ge.f32.partialorder %v452_v51, 0.0  ;;  %v578_v57 = vmul.f32 0.2, %v452_v51  ;;  %v508_v58 = vadd.f32 %v1251_v24, %v507_v38  ;;  %v465_v59 = vadd.f32 %v1096_v55, %v1251_v24  ;;  %v456_v60 = vpop.f32.mrb[13].mxu0  ;;  %v520_v61 = vpop.f32.mrb[13].mxu1 }
 0x113   : > { %v607_v62 = vsel %vm543_vm2, %v441_v32, %v575_v46  ;;  %vm562_vm5 = vcmp.ge.f32.partialorder %v516_v53, 0.0  ;;  %v594_v63 = vmul.f32 0.2, %v516_v53  ;;  %vm544_vm6 = vcmp.ge.f32.partialorder %v444_v54, 0.0  ;;  %v1097_v0 = vpop.f32.mrb[14].mxu0  ;;  %v1113_v1 = vpop.f32.mrb[14].mxu1 }
 0x114   : > { %v610_v2 = vsel %vm546_vm4, %v452_v51, %v578_v57  ;;  %v576_v3 = vmul.f32 0.2, %v444_v54  ;;  %vm560_vm7 = vcmp.ge.f32.partialorder %v508_v58, 0.0  ;;  %v592_v4 = vmul.f32 0.2, %v508_v58  ;;  %v459_v5 = vpop.f32.mrb[15].mxu0 }
 0x115   : > { %v623_v6 = vsel %vm559_vm3, %v505_v47, %v591_v52  ;;  %v975_v7 = vpack.c.bf16 %v610_v2, %v609_v49  ;;  %v626_v8 = vsel %vm562_vm5, %v516_v53, %v594_v63  ;;  %v581_v9 = vmul.f32 0.2, %v465_v59  ;;  %v523_v10 = vpop.f32.mrb[15].mxu1 }
 0x116   : > { %v1015_v11 = vpack.c.bf16 %v626_v8, %v625_v50  ;;  %v608_v12 = vsel %vm544_vm6, %v444_v54, %v576_v3  ;;  %v624_v13 = vsel %vm560_vm7, %v508_v58, %v592_v4  ;;  %v529_v14 = vadd.f32 %v1112_v56, %v1251_v24 }
 0x117   : > { %1031 = vst [vmem:[%s1268_s13 + $0x28] sm:$0xff] %v975_v7   ;;  %v970_v15 = vpack.c.bf16 %v608_v12, %v607_v62  ;;  %v1010_v16 = vpack.c.bf16 %v624_v13, %v623_v6  ;;  %vm549_vm8 = vcmp.ge.f32.partialorder %v465_v59, 0.0  ;;  %v457_v17 = vadd.f32 %v1251_v24, %v456_v60 }
 0x118   : > { %1039 = vst [vmem:[%s1268_s13 + $0x68] sm:$0xff] %v1015_v11   ;;  %vm565_vm9 = vcmp.ge.f32.partialorder %v529_v14, 0.0  ;;  %v597_v18 = vmul.f32 0.2, %v529_v14  ;;  %v521_v19 = vadd.f32 %v1251_v24, %v520_v61  ;;  %v468_v20 = vadd.f32 %v1097_v0, %v1251_v24 }
 0x119   : > { %1030 = vst [vmem:[%s1268_s13 + $0x20] sm:$0xff] %v970_v15   ;;  %1038 = vst [vmem:[%s1268_s13 + $0x60] sm:$0xff] %v1010_v16   ;;  %v579_v21 = vmul.f32 0.2, %v457_v17  ;;  %v532_v22 = vadd.f32 %v1113_v1, %v1251_v24  ;;  %v460_v23 = vadd.f32 %v1251_v24, %v459_v5  ;;  %v613_v25 = vsel %vm549_vm8, %v465_v59, %v581_v9 }
 0x11a   : > { %vm547_vm10 = vcmp.ge.f32.partialorder %v457_v17, 0.0  ;;  %vm550_vm11 = vcmp.ge.f32.partialorder %v468_v20, 0.0  ;;  %v629_v26 = vsel %vm565_vm9, %v529_v14, %v597_v18  ;;  %v582_v27 = vmul.f32 0.2, %v468_v20 }
 0x11b   : > { %vm566_vm12 = vcmp.ge.f32.partialorder %v532_v22, 0.0  ;;  %v598_v28 = vmul.f32 0.2, %v532_v22  ;;  %vm563_vm13 = vcmp.ge.f32.partialorder %v521_v19, 0.0  ;;  %vm548_vm14 = vcmp.ge.f32.partialorder %v460_v23, 0.0 }
 0x11c   : > { %v580_v29 = vmul.f32 0.2, %v460_v23  ;;  %v524_v30 = vadd.f32 %v1251_v24, %v523_v10  ;;  %v611_v31 = vsel %vm547_vm10, %v457_v17, %v579_v21  ;;  %v595_v32 = vmul.f32 0.2, %v521_v19 }
 0x11d   : > { %v614_v33 = vsel %vm550_vm11, %v468_v20, %v582_v27  ;;  %v630_v34 = vsel %vm566_vm12, %v532_v22, %v598_v28 }
 0x11e   : > { %v985_v35 = vpack.c.bf16 %v614_v33, %v613_v25  ;;  %v1025_v36 = vpack.c.bf16 %v630_v34, %v629_v26  ;;  %v612_v37 = vsel %vm548_vm14, %v460_v23, %v580_v29  ;;  %vm564_vm15 = vcmp.ge.f32.partialorder %v524_v30, 0.0 }
 0x11f   : > { %v980_v38 = vpack.c.bf16 %v612_v37, %v611_v31  ;;  %v596_v39 = vmul.f32 0.2, %v524_v30  ;;  %v627_v40 = vsel %vm563_vm13, %v521_v19, %v595_v32 }
 0x120   : > { %1033 = vst [vmem:[%s1268_s13 + $0x38] sm:$0xff] %v985_v35   ;;  %1041 = vst [vmem:[%s1268_s13 + $0x78] sm:$0xff] %v1025_v36  }
 0x121   : > { %1032 = vst [vmem:[%s1268_s13 + $0x30] sm:$0xff] %v980_v38   ;;  %v628_v41 = vsel %vm564_vm15, %v524_v30, %v596_v39 }
 0x122   : > { %v1020_v42 = vpack.c.bf16 %v628_v41, %v627_v40 }
 0x124   : > { %1040 = vst [vmem:[%s1268_s13 + $0x70] sm:$0xff] %v1020_v42  }
 0x125 PF: > { %s13_s12 = sadd.s32 1, %s1168_s12  }
 0x126   : > { %p10_p4 = scmp.ge.s32.totalorder %s13_s12, 4  }
 0x128   :  { %12 = sbr.rel (!%p10_p4) target bundleno = 1 (0x1), region = 62 }

// kernel: discriminator_funiegan_pallas.6
= control target key start
LH: loop header
LB: loop body
LE: loop exit
PB: predicated region body
PF: predicated region fallthrough
CT: control target
= control target key end

     0   :  { %s1060_s12 = smov 0   ;;  %s1216_s0 = inlined_call_operand.vmem [shape: bf16[128,512], index: 0, kind: input, shape index: {}]   ;;  %s1217_s1 = inlined_call_operand.vmem [shape: bf16[512,128], index: 1, kind: input, shape index: {}]   ;;  %s1218_s2 = inlined_call_operand.vmem [shape: f32[1,128], index: 2, kind: input, shape index: {}]   ;;  %s1219_s3 = inlined_call_operand.vmem [shape: bf16[128,128], index: 3, kind: output, shape index: {}]  }
   0x1 LB: > { %s787_s13 = sadd.s32 4294967295, %s1038_s12   ;;  %p791_p0 = scmp.ge.s32.totalorder %s1038_s12, 1  ;;  %s1038_s12 = sphi %s1060_s12, %s13_s12  }
   0x2   : > { %p139_p1 = scmp.lt.s32.totalorder %s1038_s12, 3 }
   0x4   : > { %p140_p2 = pnand %p791_p0, %p139_p1 }
   0x5   : > { %v976_v0 = vld [vmem:[%s1217_s1 + $0x40] sm:$0xff] (!%p140_p2)   ;;  %v980_v4 = vld [vmem:[%s1217_s1 + $0x48] sm:$0xff] (!%p140_p2)   ;;  %v984_v8 = vld [vmem:[%s1217_s1 + $0x50] sm:$0xff] (!%p140_p2)   ;;  %s792_s21 = sshll.u32 (!%p140_p2), %s787_s13, 3 }
   0x6   : > { %143 = sbr.rel (%p140_p2) target bundleno = 290 (0x122), region = 32  ;;  %v977_v1 = vld [vmem:[%s1217_s1 + $0xc0] sm:$0xff] (!%p140_p2)   ;;  %888 = vmatprep.subr.bf16.mxu0 (!%p140_p2), %v976_v0  ;;  %v981_v5 = vld [vmem:[%s1217_s1 + $0xc8] sm:$0xff] (!%p140_p2)   ;;  %v985_v9 = vld [vmem:[%s1217_s1 + $0xd0] sm:$0xff] (!%p140_p2)   ;;  %p165_p3 = scmp.lt.s32.totalorder (!%p140_p2), %s792_s21, 15 }
   0x7   : > { %v978_v2 = vld [vmem:[%s1217_s1] sm:$0xff] (!%p140_p2)   ;;  %928 = vmatprep.subr.bf16.mxu1 (!%p140_p2), %v977_v1  ;;  %v982_v6 = vld [vmem:[%s1217_s1 + $0x8] sm:$0xff] (!%p140_p2)   ;;  %v986_v10 = vld [vmem:[%s1217_s1 + $0x10] sm:$0xff] (!%p140_p2)  }
   0x8   : > { %v979_v3 = vld [vmem:[%s1217_s1 + $0x80] sm:$0xff] (!%p140_p2)   ;;  %889 = vmatpush3.bf16.msra.mxu0 (!%p140_p2), %v978_v2  ;;  %v983_v7 = vld [vmem:[%s1217_s1 + $0x88] sm:$0xff] (!%p140_p2)   ;;  %v987_v11 = vld [vmem:[%s1217_s1 + $0x90] sm:$0xff] (!%p140_p2)  }
   0x9   : > { %929 = vmatpush3.bf16.msra.mxu1 (!%p140_p2), %v979_v3  ;;  %890 = vmatprep.subr.bf16.mxu0 (!%p140_p2), %v980_v4  ;;  %v988_v12 = vld [vmem:[%s1217_s1 + $0x58] sm:$0xff] (!%p140_p2)   ;;  %v992_v16 = vld [vmem:[%s1217_s1 + $0x60] sm:$0xff] (!%p140_p2)   ;;  %v996_v20 = vld [vmem:[%s1217_s1 + $0x68] sm:$0xff] (!%p140_p2)  }
   0xa   : > { %930 = vmatprep.subr.bf16.mxu1 (!%p140_p2), %v981_v5  ;;  %v989_v13 = vld [vmem:[%s1217_s1 + $0xd8] sm:$0xff] (!%p140_p2)   ;;  %v993_v17 = vld [vmem:[%s1217_s1 + $0xe0] sm:$0xff] (!%p140_p2)   ;;  %v997_v21 = vld [vmem:[%s1217_s1 + $0xe8] sm:$0xff] (!%p140_p2)  }
   0xb   : > { %v990_v14 = vld [vmem:[%s1217_s1 + $0x18] sm:$0xff] (!%p140_p2)   ;;  %v994_v18 = vld [vmem:[%s1217_s1 + $0x20] sm:$0xff] (!%p140_p2)   ;;  %v998_v22 = vld [vmem:[%s1217_s1 + $0x28] sm:$0xff] (!%p140_p2)  }
   0xc   : > { %891 = vmatpush3.bf16.msra.mxu0 (!%p140_p2), %v982_v6  ;;  %v991_v15 = vld [vmem:[%s1217_s1 + $0x98] sm:$0xff] (!%p140_p2)   ;;  %v995_v19 = vld [vmem:[%s1217_s1 + $0xa0] sm:$0xff] (!%p140_p2)   ;;  %v999_v23 = vld [vmem:[%s1217_s1 + $0xa8] sm:$0xff] (!%p140_p2)  }
   0xd   : > { %931 = vmatpush3.bf16.msra.mxu1 %v983_v7  ;;  %892 = vmatprep.subr.bf16.mxu0 %v984_v8  ;;  %s1221_s21 = smov (!%p165_p3, %s792_s21), 15  ;;  %v1000_v24 = vld [vmem:[%s1217_s1 + $0x70] sm:$0xff]   ;;  %v1004_v28 = vld [vmem:[%s1217_s1 + $0x78] sm:$0xff]   ;;  %v1193_v50 = vld [vmem:[%s1218_s2] ss:$0 sm:$0xff] }
   0xe   : > { %932 = vmatprep.subr.bf16.mxu1 %v985_v9  ;;  %v1001_v25 = vld [vmem:[%s1217_s1 + $0xf0] sm:$0xff]   ;;  %s856_s18 = sshll.u32 %s1221_s21, 4  ;;  %v1005_v29 = vld [vmem:[%s1217_s1 + $0xf8] sm:$0xff]   ;;  %s796_s7 = sshll.u32 %s1221_s21, 2 }
   0xf   : > { %v1002_v26 = vld [vmem:[%s1217_s1 + $0x30] sm:$0xff]   ;;  %s1166_s28 = scalar_lea.vmem %s1216_s0, %s856_s18  ;;  %v1006_v30 = vld [vmem:[%s1217_s1 + $0x38] sm:$0xff]   ;;  %s1201_s10 = scalar_lea.vmem %s1219_s3, %s796_s7 }
  0x10   : > { %893 = vmatpush3.bf16.msra.mxu0 %v986_v10  ;;  %v1003_v27 = vld [vmem:[%s1217_s1 + $0xb0] sm:$0xff]   ;;  %v1007_v31 = vld [vmem:[%s1217_s1 + $0xb8] sm:$0xff]  }
  0x11   : > { %933 = vmatpush3.bf16.msra.mxu1 %v987_v11  ;;  %894 = vmatprep.subr.bf16.mxu0 %v988_v12  ;;  %v1008_v32 = vld [vmem:[%s1166_s28] ss:$16 sps:$4 sm:$0xff]   ;;  %v1010_v33 = vld [vmem:[%s1166_s28 + $0x4] ss:$16 sps:$4 sm:$0xff]   ;;  %v1011_v34 = vld [vmem:[%s1166_s28 + $0x8] ss:$16 sps:$4 sm:$0xff]  }
  0x12   : > { %934 = vmatprep.subr.bf16.mxu1 %v989_v13  ;;  %v1013_v35 = vld [vmem:[%s1166_s28 + $0xc] ss:$16 sps:$4 sm:$0xff]   ;;  %569 = vmatprep.mubr.bf16.mxu0 %v1010_v33  ;;  %v1014_v36 = vld [vmem:[%s1166_s28 + $0x24] ss:$16 sps:$4 sm:$0xff]   ;;  %v1018_v38 = vld [vmem:[%s1166_s28 + $0x20] ss:$16 sps:$4 sm:$0xff]  }
  0x13   : > { %634 = vmatprep.mubr.bf16.mxu1 %v1013_v35  ;;  %v1016_v37 = vld [vmem:[%s1166_s28 + $0x2c] ss:$16 sps:$4 sm:$0xff]   ;;  %v1019_v39 = vld [vmem:[%s1166_s28 + $0x28] ss:$16 sps:$4 sm:$0xff]   ;;  %v1020_v40 = vld [vmem:[%s1166_s28 + $0x44] ss:$16 sps:$4 sm:$0xff]  }
  0x14   : > { %895 = vmatpush3.bf16.msra.mxu0 %v990_v14  ;;  %v1022_v41 = vld [vmem:[%s1166_s28 + $0x4c] ss:$16 sps:$4 sm:$0xff]   ;;  %v1024_v42 = vld [vmem:[%s1166_s28 + $0x40] ss:$16 sps:$4 sm:$0xff]   ;;  %v1025_v43 = vld [vmem:[%s1166_s28 + $0x48] ss:$16 sps:$4 sm:$0xff]  }
  0x15   : > { %935 = vmatpush3.bf16.msra.mxu1 %v991_v15  ;;  %896 = vmatprep.subr.bf16.mxu0 %v992_v16  ;;  %v1026_v44 = vld [vmem:[%s1166_s28 + $0x64] ss:$16 sps:$4 sm:$0xff]   ;;  %v1028_v45 = vld [vmem:[%s1166_s28 + $0x6c] ss:$16 sps:$4 sm:$0xff]   ;;  %v1030_v46 = vld [vmem:[%s1166_s28 + $0x60] ss:$16 sps:$4 sm:$0xff]  }
  0x16   : > { %936 = vmatprep.subr.bf16.mxu1 %v993_v17  ;;  %v1031_v47 = vld [vmem:[%s1166_s28 + $0x68] ss:$16 sps:$4 sm:$0xff]  }
  0x18   : > { %897 = vmatpush3.bf16.msra.mxu0 %v994_v18 }
  0x19   : > { %937 = vmatpush3.bf16.msra.mxu1 %v995_v19  ;;  %898 = vmatprep.subr.bf16.mxu0 %v996_v20 }
  0x1a   : > { %938 = vmatprep.subr.bf16.mxu1 %v997_v21 }
  0x1c   : > { %899 = vmatpush3.bf16.msra.mxu0 %v998_v22 }
  0x1d   : > { %939 = vmatpush3.bf16.msra.mxu1 %v999_v23  ;;  %900 = vmatprep.subr.bf16.mxu0 %v1000_v24 }
  0x1e   : > { %940 = vmatprep.subr.bf16.mxu1 %v1001_v25 }
  0x20   : > { %901 = vmatpush3.bf16.msra.mxu0 %v1002_v26 }
  0x21   : > { %941 = vmatpush3.bf16.msra.mxu1 %v1003_v27  ;;  %902 = vmatprep.subr.bf16.mxu0 %v1004_v28 }
  0x22   : > { %942 = vmatprep.subr.bf16.mxu1 %v1005_v29 }
  0x24   : > { %903 = vmatpush3.bf16.msra.mxu0 %v1006_v30 }
  0x25   : > { %943 = vmatpush3.bf16.msra.mxu1 %v1007_v31 }
  0x27   : > { %570 = vmatmul.mubr.bf16.vlgmr.msra.gmra.mrb[0].mxu0 %v1008_v32 }
  0x28   : > { %635 = vmatmul.mubr.bf16.vlgmr.msra.gmra.mrb[0].mxu1 %v1011_v34  ;;  %577 = vmatprep.mubr.bf16.mxu0 %v1014_v36 }
  0x29   : > { %642 = vmatprep.mubr.bf16.mxu1 %v1016_v37 }
  0x2f   : > { %578 = vmatmul.mubr.bf16.gmra.mrb[4].mxu0 %v1018_v38 }
  0x30   : > { %643 = vmatmul.mubr.bf16.gmra.mrb[4].mxu1 %v1019_v39  ;;  %585 = vmatprep.mubr.bf16.mxu0 %v1020_v40 }
  0x31   : > { %650 = vmatprep.mubr.bf16.mxu1 %v1022_v41 }
  0x37   : > { %586 = vmatmul.mubr.bf16.gmra.mrb[8].mxu0 %v1024_v42 }
  0x38   : > { %651 = vmatmul.mubr.bf16.gmra.mrb[8].mxu1 %v1025_v43  ;;  %593 = vmatprep.mubr.bf16.mxu0 %v1026_v44 }
  0x39   : > { %658 = vmatprep.mubr.bf16.mxu1 %v1028_v45 }
  0x3f   : > { %594 = vmatmul.mubr.bf16.gmra.mrb[12].mxu0 %v1030_v46 }
  0x40   : > { %659 = vmatmul.mubr.bf16.gmra.mrb[12].mxu1 %v1031_v47 }
  0xfa   : > { %v904_v48 = vpop.f32.mrb[0].mxu0 }
  0xfb   : > { %v944_v49 = vpop.f32.mrb[0].mxu1  ;;  %v905_v51 = vpop.f32.mrb[1].mxu0 }
  0xfc   : > { %v906_v52 = vadd.f32 %v905_v51, %v904_v48  ;;  %v945_v53 = vpop.f32.mrb[1].mxu1  ;;  %v907_v54 = vpop.f32.mrb[2].mxu0 }
  0xfd   : > { %v946_v55 = vadd.f32 %v945_v53, %v944_v49  ;;  %v947_v56 = vpop.f32.mrb[2].mxu1  ;;  %v908_v57 = vpop.f32.mrb[3].mxu0 }
  0xfe   : > { %v572_v58 = vadd.f32 %v906_v52, %v1193_v50  ;;  %v909_v59 = vadd.f32 %v908_v57, %v907_v54  ;;  %v948_v60 = vpop.f32.mrb[3].mxu1 }
  0xff   : > { %v949_v61 = vadd.f32 %v948_v60, %v947_v56 }
 0x100   : > { %v637_v62 = vadd.f32 %v946_v55, %v572_v58  ;;  %v575_v63 = vadd.f32 %v909_v59, %v1193_v50 }
 0x102   : > { %v675_v0 = vmul.f32 0.2, %v637_v62  ;;  %v640_v1 = vadd.f32 %v949_v61, %v575_v63  ;;  %v910_v2 = vpop.f32.mrb[4].mxu0  ;;  %vm667_vm0 = vcmp.ge.f32.partialorder %v637_v62, 0.0 }
 0x103   : > { %v950_v3 = vpop.f32.mrb[4].mxu1  ;;  %v911_v4 = vpop.f32.mrb[5].mxu0 }
 0x104   : > { %vm668_vm1 = vcmp.ge.f32.partialorder %v640_v1, 0.0  ;;  %v676_v5 = vmul.f32 0.2, %v640_v1  ;;  %v912_v6 = vadd.f32 %v911_v4, %v910_v2  ;;  %v951_v7 = vpop.f32.mrb[5].mxu1  ;;  %v913_v8 = vpop.f32.mrb[6].mxu0  ;;  %v683_v12 = vsel %vm667_vm0, %v637_v62, %v675_v0 }
 0x105   : > { %v952_v9 = vadd.f32 %v951_v7, %v950_v3  ;;  %v953_v10 = vpop.f32.mrb[6].mxu1  ;;  %v914_v11 = vpop.f32.mrb[7].mxu0 }
 0x106   : > { %v684_v13 = vsel %vm668_vm1, %v640_v1, %v676_v5  ;;  %v580_v14 = vadd.f32 %v912_v6, %v1193_v50  ;;  %v915_v15 = vadd.f32 %v914_v11, %v913_v8  ;;  %v954_v16 = vpop.f32.mrb[7].mxu1 }
 0x107   : > { %v868_v17 = vpack.c.bf16 %v684_v13, %v683_v12  ;;  %v955_v18 = vadd.f32 %v954_v16, %v953_v10 }
 0x108   : > { %v645_v19 = vadd.f32 %v952_v9, %v580_v14  ;;  %v583_v20 = vadd.f32 %v915_v15, %v1193_v50 }
 0x109   : > { %869 = vst [vmem:[%s1201_s10] sm:$0xff] %v868_v17  }
 0x10a   : > { %v677_v21 = vmul.f32 0.2, %v645_v19  ;;  %v648_v22 = vadd.f32 %v955_v18, %v583_v20  ;;  %v916_v23 = vpop.f32.mrb[8].mxu0  ;;  %vm669_vm2 = vcmp.ge.f32.partialorder %v645_v19, 0.0 }
 0x10b   : > { %v956_v24 = vpop.f32.mrb[8].mxu1  ;;  %v917_v25 = vpop.f32.mrb[9].mxu0 }
 0x10c   : > { %vm670_vm3 = vcmp.ge.f32.partialorder %v648_v22, 0.0  ;;  %v678_v26 = vmul.f32 0.2, %v648_v22  ;;  %v918_v27 = vadd.f32 %v917_v25, %v916_v23  ;;  %v957_v28 = vpop.f32.mrb[9].mxu1  ;;  %v919_v29 = vpop.f32.mrb[10].mxu0  ;;  %v685_v33 = vsel %vm669_vm2, %v645_v19, %v677_v21 }
 0x10d   : > { %v958_v30 = vadd.f32 %v957_v28, %v956_v24  ;;  %v959_v31 = vpop.f32.mrb[10].mxu1  ;;  %v920_v32 = vpop.f32.mrb[11].mxu0 }
 0x10e   : > { %v686_v34 = vsel %vm670_vm3, %v648_v22, %v678_v26  ;;  %v588_v35 = vadd.f32 %v918_v27, %v1193_v50  ;;  %v921_v36 = vadd.f32 %v920_v32, %v919_v29  ;;  %v960_v37 = vpop.f32.mrb[11].mxu1 }
 0x10f   : > { %v873_v38 = vpack.c.bf16 %v686_v34, %v685_v33  ;;  %v961_v39 = vadd.f32 %v960_v37, %v959_v31 }
 0x110   : > { %v653_v40 = vadd.f32 %v958_v30, %v588_v35  ;;  %v591_v41 = vadd.f32 %v921_v36, %v1193_v50 }
 0x111   : > { %885 = vst [vmem:[%s1201_s10 + $0x8] sm:$0xff] %v873_v38  }
 0x112   : > { %v679_v42 = vmul.f32 0.2, %v653_v40  ;;  %v656_v43 = vadd.f32 %v961_v39, %v591_v41  ;;  %v922_v44 = vpop.f32.mrb[12].mxu0  ;;  %vm671_vm4 = vcmp.ge.f32.partialorder %v653_v40, 0.0 }
 0x113   : > { %v962_v45 = vpop.f32.mrb[12].mxu1  ;;  %v923_v46 = vpop.f32.mrb[13].mxu0 }
 0x114   : > { %vm672_vm5 = vcmp.ge.f32.partialorder %v656_v43, 0.0  ;;  %v680_v47 = vmul.f32 0.2, %v656_v43  ;;  %v924_v48 = vadd.f32 %v923_v46, %v922_v44  ;;  %v963_v49 = vpop.f32.mrb[13].mxu1  ;;  %v925_v51 = vpop.f32.mrb[14].mxu0  ;;  %v687_v55 = vsel %vm671_vm4, %v653_v40, %v679_v42 }
 0x115   : > { %v964_v52 = vadd.f32 %v963_v49, %v962_v45  ;;  %v965_v53 = vpop.f32.mrb[14].mxu1  ;;  %v926_v54 = vpop.f32.mrb[15].mxu0 }
 0x116   : > { %v688_v56 = vsel %vm672_vm5, %v656_v43, %v680_v47  ;;  %v596_v57 = vadd.f32 %v924_v48, %v1193_v50  ;;  %v927_v58 = vadd.f32 %v926_v54, %v925_v51  ;;  %v966_v59 = vpop.f32.mrb[15].mxu1 }
 0x117   : > { %v878_v60 = vpack.c.bf16 %v688_v56, %v687_v55  ;;  %v967_v61 = vadd.f32 %v966_v59, %v965_v53 }
 0x118   : > { %v661_v62 = vadd.f32 %v964_v52, %v596_v57  ;;  %v599_v63 = vadd.f32 %v927_v58, %v1193_v50 }
 0x119   : > { %886 = vst [vmem:[%s1201_s10 + $0x10] sm:$0xff] %v878_v60  }
 0x11a   : > { %v681_v0 = vmul.f32 0.2, %v661_v62  ;;  %v664_v1 = vadd.f32 %v967_v61, %v599_v63  ;;  %vm673_vm6 = vcmp.ge.f32.partialorder %v661_v62, 0.0 }
 0x11c   : > { %vm674_vm7 = vcmp.ge.f32.partialorder %v664_v1, 0.0  ;;  %v682_v2 = vmul.f32 0.2, %v664_v1  ;;  %v689_v3 = vsel %vm673_vm6, %v661_v62, %v681_v0 }
 0x11e   : > { %v690_v4 = vsel %vm674_vm7, %v664_v1, %v682_v2 }
 0x11f   : > { %v883_v5 = vpack.c.bf16 %v690_v4, %v689_v3 }
 0x121   : > { %887 = vst [vmem:[%s1201_s10 + $0x18] sm:$0xff] %v883_v5  }
 0x122 PF: > { %s13_s12 = sadd.s32 1, %s1038_s12  }
 0x123   : > { %p10_p4 = scmp.ge.s32.totalorder %s13_s12, 4  }
 0x125   :  { %12 = sbr.rel (!%p10_p4) target bundleno = 1 (0x1), region = 62 }

// kernel: discriminator_funiegan_pallas.7
= control target key start
LH: loop header
LB: loop body
LE: loop exit
PB: predicated region body
PF: predicated region fallthrough
CT: control target
= control target key end

     0   :  { %s1264_s12 = smov 0   ;;  %s1492_s0 = inlined_call_operand.vmem [shape: bf16[32,1024], index: 0, kind: input, shape index: {}]   ;;  %s1493_s1 = inlined_call_operand.vmem [shape: bf16[1024,128], index: 1, kind: input, shape index: {}]   ;;  %s1494_s2 = inlined_call_operand.vmem [shape: f32[1,128], index: 2, kind: input, shape index: {}]   ;;  %s1495_s3 = inlined_call_operand.vmem [shape: bf16[32,128], index: 3, kind: output, shape index: {}]  }
   0x1 LB: > { %s981_s13 = sadd.s32 4294967295, %s1242_s12   ;;  %p985_p0 = scmp.ge.s32.totalorder %s1242_s12, 1  ;;  %s1242_s12 = sphi %s1264_s12, %s13_s12  }
   0x2   : > { %p139_p1 = scmp.lt.s32.totalorder %s1242_s12, 3 }
   0x4   : > { %p140_p2 = pnand %p985_p0, %p139_p1 }
   0x5   : > { %v1172_v0 = vld [vmem:[%s1493_s1 + $0x40] sm:$0xff] (!%p140_p2)   ;;  %v1176_v4 = vld [vmem:[%s1493_s1 + $0x48] sm:$0xff] (!%p140_p2)   ;;  %v1180_v8 = vld [vmem:[%s1493_s1 + $0x50] sm:$0xff] (!%p140_p2)   ;;  %s986_s21 = sshll.u32 (!%p140_p2), %s981_s13, 1 }
   0x6   : > { %143 = sbr.rel (%p140_p2) target bundleno = 298 (0x12a), region = 32  ;;  %v1173_v1 = vld [vmem:[%s1493_s1 + $0xc0] sm:$0xff] (!%p140_p2)   ;;  %1076 = vmatprep.subr.bf16.mxu0 (!%p140_p2), %v1172_v0  ;;  %v1177_v5 = vld [vmem:[%s1493_s1 + $0xc8] sm:$0xff] (!%p140_p2)   ;;  %v1181_v9 = vld [vmem:[%s1493_s1 + $0xd0] sm:$0xff] (!%p140_p2)   ;;  %p165_p3 = scmp.lt.s32.totalorder (!%p140_p2), %s986_s21, 3 }
   0x7   : > { %v1174_v2 = vld [vmem:[%s1493_s1] sm:$0xff] (!%p140_p2)   ;;  %1098 = vmatprep.subr.bf16.mxu1 (!%p140_p2), %v1173_v1  ;;  %v1178_v6 = vld [vmem:[%s1493_s1 + $0x8] sm:$0xff] (!%p140_p2)   ;;  %v1182_v10 = vld [vmem:[%s1493_s1 + $0x10] sm:$0xff] (!%p140_p2)  }
   0x8   : > { %v1175_v3 = vld [vmem:[%s1493_s1 + $0x80] sm:$0xff] (!%p140_p2)   ;;  %1077 = vmatpush3.bf16.msra.mxu0 (!%p140_p2), %v1174_v2  ;;  %v1179_v7 = vld [vmem:[%s1493_s1 + $0x88] sm:$0xff] (!%p140_p2)   ;;  %v1183_v11 = vld [vmem:[%s1493_s1 + $0x90] sm:$0xff] (!%p140_p2)  }
   0x9   : > { %1099 = vmatpush3.bf16.msra.mxu1 (!%p140_p2), %v1175_v3  ;;  %1078 = vmatprep.subr.bf16.mxu0 (!%p140_p2), %v1176_v4  ;;  %v1184_v12 = vld [vmem:[%s1493_s1 + $0x58] sm:$0xff] (!%p140_p2)   ;;  %v1188_v16 = vld [vmem:[%s1493_s1 + $0x60] sm:$0xff] (!%p140_p2)   ;;  %v1192_v20 = vld [vmem:[%s1493_s1 + $0x68] sm:$0xff] (!%p140_p2)  }
   0xa   : > { %1100 = vmatprep.subr.bf16.mxu1 (!%p140_p2), %v1177_v5  ;;  %v1185_v13 = vld [vmem:[%s1493_s1 + $0xd8] sm:$0xff] (!%p140_p2)   ;;  %v1189_v17 = vld [vmem:[%s1493_s1 + $0xe0] sm:$0xff] (!%p140_p2)   ;;  %v1193_v21 = vld [vmem:[%s1493_s1 + $0xe8] sm:$0xff] (!%p140_p2)  }
   0xb   : > { %v1186_v14 = vld [vmem:[%s1493_s1 + $0x18] sm:$0xff] (!%p140_p2)   ;;  %v1190_v18 = vld [vmem:[%s1493_s1 + $0x20] sm:$0xff] (!%p140_p2)   ;;  %v1194_v22 = vld [vmem:[%s1493_s1 + $0x28] sm:$0xff] (!%p140_p2)  }
   0xc   : > { %1079 = vmatpush3.bf16.msra.mxu0 (!%p140_p2), %v1178_v6  ;;  %v1187_v15 = vld [vmem:[%s1493_s1 + $0x98] sm:$0xff] (!%p140_p2)   ;;  %v1191_v19 = vld [vmem:[%s1493_s1 + $0xa0] sm:$0xff] (!%p140_p2)   ;;  %v1195_v23 = vld [vmem:[%s1493_s1 + $0xa8] sm:$0xff] (!%p140_p2)  }
   0xd   : > { %1101 = vmatpush3.bf16.msra.mxu1 %v1179_v7  ;;  %1080 = vmatprep.subr.bf16.mxu0 %v1180_v8  ;;  %s1497_s21 = smov (!%p165_p3, %s986_s21), 3  ;;  %v1196_v24 = vld [vmem:[%s1493_s1 + $0x70] sm:$0xff]   ;;  %v1200_v28 = vld [vmem:[%s1493_s1 + $0x78] sm:$0xff]   ;;  %v1204_v40 = vld [vmem:[%s1493_s1 + $0x140] sm:$0xff]  }
   0xe   : > { %1102 = vmatprep.subr.bf16.mxu1 %v1181_v9  ;;  %v1197_v25 = vld [vmem:[%s1493_s1 + $0xf0] sm:$0xff]   ;;  %s1068_s18 = sshll.u32 %s1497_s21, 5  ;;  %v1201_v29 = vld [vmem:[%s1493_s1 + $0xf8] sm:$0xff]   ;;  %v1205_v41 = vld [vmem:[%s1493_s1 + $0x1c0] sm:$0xff]  }
   0xf   : > { %v1198_v26 = vld [vmem:[%s1493_s1 + $0x30] sm:$0xff]   ;;  %s1370_s28 = scalar_lea.vmem %s1492_s0, %s1068_s18  ;;  %v1202_v30 = vld [vmem:[%s1493_s1 + $0x38] sm:$0xff]   ;;  %v1206_v42 = vld [vmem:[%s1493_s1 + $0x100] sm:$0xff]  }
  0x10   : > { %1081 = vmatpush3.bf16.msra.mxu0 %v1182_v10  ;;  %v1199_v27 = vld [vmem:[%s1493_s1 + $0xb0] sm:$0xff]   ;;  %v1203_v31 = vld [vmem:[%s1493_s1 + $0xb8] sm:$0xff]   ;;  %v178_v32 = vld [vmem:[%s1370_s28] sm:$0xff] }
  0x11   : > { %1103 = vmatpush3.bf16.msra.mxu1 %v1183_v11  ;;  %1082 = vmatprep.subr.bf16.mxu0 %v1184_v12  ;;  %v182_v33 = vld [vmem:[%s1370_s28 + $0x20] sm:$0xff]  ;;  %v179_v34 = vld [vmem:[%s1370_s28 + $0x8] sm:$0xff]  ;;  %v1212_v48 = vld [vmem:[%s1493_s1 + $0x150] sm:$0xff]  }
  0x12   : > { %1104 = vmatprep.subr.bf16.mxu1 %v1185_v13  ;;  %v992_v35 = vcombine.low %v178_v32, %v182_v33  ;;  %v993_v36 = vcombine.high %v178_v32, %v182_v33  ;;  %v183_v37 = vld [vmem:[%s1370_s28 + $0x28] sm:$0xff]  ;;  %v1207_v43 = vld [vmem:[%s1493_s1 + $0x180] sm:$0xff]   ;;  %v1213_v49 = vld [vmem:[%s1493_s1 + $0x1d0] sm:$0xff]  }
  0x13   : > { %v994_v38 = vcombine.low %v179_v34, %v183_v37  ;;  %v995_v39 = vcombine.high %v179_v34, %v183_v37  ;;  %v1208_v44 = vld [vmem:[%s1493_s1 + $0x148] sm:$0xff]   ;;  %v1214_v50 = vld [vmem:[%s1493_s1 + $0x110] sm:$0xff]   ;;  %v1216_v52 = vld [vmem:[%s1493_s1 + $0x158] sm:$0xff]  }
  0x14   : > { %1083 = vmatpush3.bf16.msra.mxu0 %v1186_v14  ;;  %777 = vmatprep.mubr.bf16.mxu0 %v993_v36  ;;  %v1209_v45 = vld [vmem:[%s1493_s1 + $0x1c8] sm:$0xff]   ;;  %v1215_v51 = vld [vmem:[%s1493_s1 + $0x190] sm:$0xff]   ;;  %v1217_v53 = vld [vmem:[%s1493_s1 + $0x1d8] sm:$0xff]  }
  0x15   : > { %1105 = vmatpush3.bf16.msra.mxu1 %v1187_v15  ;;  %1084 = vmatprep.subr.bf16.mxu0 %v1188_v16  ;;  %v1210_v46 = vld [vmem:[%s1493_s1 + $0x108] sm:$0xff]   ;;  %v1218_v54 = vld [vmem:[%s1493_s1 + $0x118] sm:$0xff]   ;;  %v1220_v56 = vld [vmem:[%s1493_s1 + $0x160] sm:$0xff]  }
  0x16   : > { %1106 = vmatprep.subr.bf16.mxu1 %v1189_v17  ;;  %818 = vmatprep.mubr.bf16.mxu1 %v995_v39  ;;  %v1211_v47 = vld [vmem:[%s1493_s1 + $0x188] sm:$0xff]   ;;  %v1219_v55 = vld [vmem:[%s1493_s1 + $0x198] sm:$0xff]   ;;  %v1221_v57 = vld [vmem:[%s1493_s1 + $0x1e0] sm:$0xff]  }
  0x17   : > { %v1222_v58 = vld [vmem:[%s1493_s1 + $0x120] sm:$0xff]   ;;  %v1224_v60 = vld [vmem:[%s1493_s1 + $0x168] sm:$0xff]   ;;  %v1228_v0 = vld [vmem:[%s1493_s1 + $0x170] sm:$0xff]  }
  0x18   : > { %1085 = vmatpush3.bf16.msra.mxu0 %v1190_v18  ;;  %v1223_v59 = vld [vmem:[%s1493_s1 + $0x1a0] sm:$0xff]   ;;  %v1225_v61 = vld [vmem:[%s1493_s1 + $0x1e8] sm:$0xff]   ;;  %v1229_v1 = vld [vmem:[%s1493_s1 + $0x1f0] sm:$0xff]  }
  0x19   : > { %1107 = vmatpush3.bf16.msra.mxu1 %v1191_v19  ;;  %1086 = vmatprep.subr.bf16.mxu0 %v1192_v20  ;;  %v1226_v62 = vld [vmem:[%s1493_s1 + $0x128] sm:$0xff]   ;;  %v1230_v2 = vld [vmem:[%s1493_s1 + $0x130] sm:$0xff]   ;;  %v1232_v4 = vld [vmem:[%s1493_s1 + $0x178] sm:$0xff]  }
  0x1a   : > { %1108 = vmatprep.subr.bf16.mxu1 %v1193_v21  ;;  %v1227_v63 = vld [vmem:[%s1493_s1 + $0x1a8] sm:$0xff]   ;;  %v1231_v3 = vld [vmem:[%s1493_s1 + $0x1b0] sm:$0xff]   ;;  %v1233_v5 = vld [vmem:[%s1493_s1 + $0x1f8] sm:$0xff]  }
  0x1b   : > { %v1234_v6 = vld [vmem:[%s1493_s1 + $0x138] sm:$0xff]   ;;  %v180_v8 = vld [vmem:[%s1370_s28 + $0x10] sm:$0xff]  ;;  %v991_v18 = vld [vmem:[%s1494_s2] ss:$0 sm:$0xff] }
  0x1c   : > { %1087 = vmatpush3.bf16.msra.mxu0 %v1194_v22  ;;  %v1235_v7 = vld [vmem:[%s1493_s1 + $0x1b8] sm:$0xff]   ;;  %v184_v9 = vld [vmem:[%s1370_s28 + $0x30] sm:$0xff] }
  0x1d   : > { %1109 = vmatpush3.bf16.msra.mxu1 %v1195_v23  ;;  %1088 = vmatprep.subr.bf16.mxu0 %v1196_v24  ;;  %v996_v10 = vcombine.low %v180_v8, %v184_v9  ;;  %v997_v11 = vcombine.high %v180_v8, %v184_v9  ;;  %v181_v12 = vld [vmem:[%s1370_s28 + $0x18] sm:$0xff] }
  0x1e   : > { %1110 = vmatprep.subr.bf16.mxu1 %v1197_v25  ;;  %v185_v13 = vld [vmem:[%s1370_s28 + $0x38] sm:$0xff]  ;;  %s990_s28 = sshll.u32 %s1497_s21, 2 }
  0x1f   : > { %v998_v14 = vcombine.low %v181_v12, %v185_v13  ;;  %v999_v15 = vcombine.high %v181_v12, %v185_v13  ;;  %s175_s29 = scalar_lea.vmem %s1495_s3, %s990_s28 }
  0x20   : > { %1089 = vmatpush3.bf16.msra.mxu0 %v1198_v26 }
  0x21   : > { %1111 = vmatpush3.bf16.msra.mxu1 %v1199_v27  ;;  %1090 = vmatprep.subr.bf16.mxu0 %v1200_v28 }
  0x22   : > { %1112 = vmatprep.subr.bf16.mxu1 %v1201_v29 }
  0x24   : > { %1091 = vmatpush3.bf16.msra.mxu0 %v1202_v30 }
  0x25   : > { %1113 = vmatpush3.bf16.msra.mxu1 %v1203_v31  ;;  %1120 = vmatprep.subr.bf16.mxu0 %v1204_v40 }
  0x26   : > { %1142 = vmatprep.subr.bf16.mxu1 %v1205_v41 }
  0x27   : > { %778 = vmatmul.mubr.bf16.vlgmr.msra.gmra.mrb[0].mxu0 %v992_v35 }
  0x28   : > { %819 = vmatmul.mubr.bf16.vlgmr.msra.gmra.mrb[0].mxu1 %v994_v38  ;;  %1121 = vmatpush3.bf16.msra.mxu0 %v1206_v42 }
  0x29   : > { %1143 = vmatpush3.bf16.msra.mxu1 %v1207_v43  ;;  %1122 = vmatprep.subr.bf16.mxu0 %v1208_v44 }
  0x2a   : > { %1144 = vmatprep.subr.bf16.mxu1 %v1209_v45  ;;  %859 = vmatprep.mubr.bf16.mxu0 %v997_v11 }
  0x2b   : > { %900 = vmatprep.mubr.bf16.mxu1 %v999_v15 }
  0x2c   : > { %1123 = vmatpush3.bf16.msra.mxu0 %v1210_v46 }
  0x2d   : > { %1145 = vmatpush3.bf16.msra.mxu1 %v1211_v47  ;;  %1124 = vmatprep.subr.bf16.mxu0 %v1212_v48 }
  0x2e   : > { %1146 = vmatprep.subr.bf16.mxu1 %v1213_v49 }
  0x30   : > { %1125 = vmatpush3.bf16.msra.mxu0 %v1214_v50 }
  0x31   : > { %1147 = vmatpush3.bf16.msra.mxu1 %v1215_v51  ;;  %1126 = vmatprep.subr.bf16.mxu0 %v1216_v52 }
  0x32   : > { %1148 = vmatprep.subr.bf16.mxu1 %v1217_v53 }
  0x34   : > { %1127 = vmatpush3.bf16.msra.mxu0 %v1218_v54 }
  0x35   : > { %1149 = vmatpush3.bf16.msra.mxu1 %v1219_v55  ;;  %1128 = vmatprep.subr.bf16.mxu0 %v1220_v56 }
  0x36   : > { %1150 = vmatprep.subr.bf16.mxu1 %v1221_v57 }
  0x38   : > { %1129 = vmatpush3.bf16.msra.mxu0 %v1222_v58 }
  0x39   : > { %1151 = vmatpush3.bf16.msra.mxu1 %v1223_v59  ;;  %1130 = vmatprep.subr.bf16.mxu0 %v1224_v60 }
  0x3a   : > { %1152 = vmatprep.subr.bf16.mxu1 %v1225_v61 }
  0x3c   : > { %1131 = vmatpush3.bf16.msra.mxu0 %v1226_v62 }
  0x3d   : > { %1153 = vmatpush3.bf16.msra.mxu1 %v1227_v63  ;;  %1132 = vmatprep.subr.bf16.mxu0 %v1228_v0 }
  0x3e   : > { %1154 = vmatprep.subr.bf16.mxu1 %v1229_v1 }
  0x40   : > { %1133 = vmatpush3.bf16.msra.mxu0 %v1230_v2 }
  0x41   : > { %1155 = vmatpush3.bf16.msra.mxu1 %v1231_v3  ;;  %1134 = vmatprep.subr.bf16.mxu0 %v1232_v4 }
  0x42   : > { %1156 = vmatprep.subr.bf16.mxu1 %v1233_v5 }
  0x44   : > { %1135 = vmatpush3.bf16.msra.mxu0 %v1234_v6 }
  0x45   : > { %1157 = vmatpush3.bf16.msra.mxu1 %v1235_v7 }
  0x47   : > { %860 = vmatmul.mubr.bf16.vlgmr.msra.gmra.mrb[4].mxu0 %v996_v10 }
  0x48   : > { %901 = vmatmul.mubr.bf16.vlgmr.msra.gmra.mrb[4].mxu1 %v998_v14 }
  0xfa   : > { %v1092_v16 = vpop.f32.mrb[0].mxu0 }
  0xfb   : > { %v1114_v17 = vpop.f32.mrb[0].mxu1  ;;  %v1093_v19 = vpop.f32.mrb[1].mxu0 }
  0xfc   : > { %v1094_v20 = vadd.f32 %v1093_v19, %v1092_v16  ;;  %v1115_v21 = vpop.f32.mrb[1].mxu1  ;;  %v1095_v22 = vpop.f32.mrb[2].mxu0 }
  0xfd   : > { %v1116_v23 = vadd.f32 %v1115_v21, %v1114_v17  ;;  %v1117_v24 = vpop.f32.mrb[2].mxu1  ;;  %v1096_v25 = vpop.f32.mrb[3].mxu0 }
  0xfe   : > { %v780_v26 = vadd.f32 %v1094_v20, %v991_v18  ;;  %v1097_v27 = vadd.f32 %v1096_v25, %v1095_v22  ;;  %v1118_v28 = vpop.f32.mrb[3].mxu1 }
  0xff   : > { %v1119_v29 = vadd.f32 %v1118_v28, %v1117_v24 }
 0x100   : > { %v821_v30 = vadd.f32 %v1116_v23, %v780_v26  ;;  %v783_v31 = vadd.f32 %v1097_v27, %v991_v18 }
 0x102   : > { %v824_v32 = vadd.f32 %v1119_v29, %v783_v31 }
 0x11a   : > { %v1136_v33 = vpop.f32.mrb[4].mxu0 }
 0x11b   : > { %v1158_v34 = vpop.f32.mrb[4].mxu1  ;;  %v1137_v35 = vpop.f32.mrb[5].mxu0 }
 0x11c   : > { %v1138_v36 = vadd.f32 %v1137_v35, %v1136_v33  ;;  %v1159_v37 = vpop.f32.mrb[5].mxu1  ;;  %v1139_v38 = vpop.f32.mrb[6].mxu0 }
 0x11d   : > { %v1160_v39 = vadd.f32 %v1159_v37, %v1158_v34  ;;  %v1161_v40 = vpop.f32.mrb[6].mxu1  ;;  %v1140_v41 = vpop.f32.mrb[7].mxu0 }
 0x11e   : > { %v862_v42 = vadd.f32 %v1138_v36, %v821_v30  ;;  %v1141_v43 = vadd.f32 %v1140_v41, %v1139_v38  ;;  %v1162_v44 = vpop.f32.mrb[7].mxu1 }
 0x11f   : > { %v1163_v45 = vadd.f32 %v1162_v44, %v1161_v40 }
 0x120   : > { %v903_v46 = vadd.f32 %v1160_v39, %v862_v42  ;;  %v865_v47 = vadd.f32 %v1141_v43, %v824_v32 }
 0x122   : > { %v911_v48 = vmul.f32 0.2, %v903_v46  ;;  %v906_v49 = vadd.f32 %v1163_v45, %v865_v47  ;;  %vm909_vm0 = vcmp.ge.f32.partialorder %v903_v46, 0.0 }
 0x124   : > { %vm910_vm1 = vcmp.ge.f32.partialorder %v906_v49, 0.0  ;;  %v912_v50 = vmul.f32 0.2, %v906_v49  ;;  %v913_v51 = vsel %vm909_vm0, %v903_v46, %v911_v48 }
 0x126   : > { %v914_v52 = vsel %vm910_vm1, %v906_v49, %v912_v50 }
 0x127   : > { %v1074_v53 = vpack.c.bf16 %v914_v52, %v913_v51 }
 0x129   : > { %1075 = vst [vmem:[%s175_s29] sm:$0xff] %v1074_v53  }
 0x12a PF: > { %s13_s12 = sadd.s32 1, %s1242_s12  }
 0x12b   : > { %p10_p4 = scmp.ge.s32.totalorder %s13_s12, 4  }
 0x12d   :  { %12 = sbr.rel (!%p10_p4) target bundleno = 1 (0x1), region = 62 }

// kernel: discriminator_funiegan_pallas.8
= control target key start
LH: loop header
LB: loop body
LE: loop exit
PB: predicated region body
PF: predicated region fallthrough
CT: control target
= control target key end

     0   :  { %s3529_s1 = inlined_call_operand.vmem [shape: bf16[2048,256], index: 1, kind: input, shape index: {}]   ;;  %s3530_s0 = inlined_call_operand.vmem [shape: bf16[8,2048], index: 0, kind: input, shape index: {}]   ;;  %s3531_s2 = inlined_call_operand.vmem [shape: f32[1,256], index: 2, kind: input, shape index: {}]   ;;  %s3532_s3 = inlined_call_operand.vmem [shape: bf16[8,256], index: 3, kind: output, shape index: {}]  }
   0x1   :  { %v2275_v0 = vld [vmem:[%s3529_s1 + $0x4] ss:$8 sps:$4 sm:$0xff]   ;;  %v2279_v2 = vld [vmem:[%s3529_s1] ss:$8 sps:$4 sm:$0xff]   ;;  %v2281_v4 = vld [vmem:[%s3529_s1 + $0x14] ss:$8 sps:$4 sm:$0xff]  }
   0x2   :  { %v2277_v1 = vld [vmem:[%s3529_s1 + $0x404] ss:$8 sps:$4 sm:$0xff]   ;;  %1626 = vmatprep.subr.bf16.mxu1 %v2275_v0  ;;  %v2280_v3 = vld [vmem:[%s3529_s1 + $0x400] ss:$8 sps:$4 sm:$0xff]   ;;  %v2283_v5 = vld [vmem:[%s3529_s1 + $0x414] ss:$8 sps:$4 sm:$0xff]  }
   0x3   :  { %1790 = vmatprep.subr.bf16.mxu0 %v2277_v1  ;;  %1627 = vmatpush1.bf16.msra.mxu1 %v2279_v2  ;;  %v2285_v6 = vld [vmem:[%s3529_s1 + $0x10] ss:$8 sps:$4 sm:$0xff]   ;;  %v2287_v8 = vld [vmem:[%s3529_s1 + $0x24] ss:$8 sps:$4 sm:$0xff]   ;;  %v2291_v10 = vld [vmem:[%s3529_s1 + $0x20] ss:$8 sps:$4 sm:$0xff]  }
   0x4   :  { %1791 = vmatpush1.bf16.msra.mxu0 %v2280_v3  ;;  %1628 = vmatprep.subr.bf16.mxu1 %v2281_v4  ;;  %v2286_v7 = vld [vmem:[%s3529_s1 + $0x410] ss:$8 sps:$4 sm:$0xff]   ;;  %v2289_v9 = vld [vmem:[%s3529_s1 + $0x424] ss:$8 sps:$4 sm:$0xff]   ;;  %v2292_v11 = vld [vmem:[%s3529_s1 + $0x420] ss:$8 sps:$4 sm:$0xff]  }
   0x5   :  { %1792 = vmatprep.subr.bf16.mxu0 %v2283_v5  ;;  %v2293_v12 = vld [vmem:[%s3529_s1 + $0x34] ss:$8 sps:$4 sm:$0xff]   ;;  %v2297_v14 = vld [vmem:[%s3529_s1 + $0x30] ss:$8 sps:$4 sm:$0xff]   ;;  %v2299_v16 = vld [vmem:[%s3529_s1 + $0x44] ss:$8 sps:$4 sm:$0xff]  }
   0x6   :  { %v2295_v13 = vld [vmem:[%s3529_s1 + $0x434] ss:$8 sps:$4 sm:$0xff]   ;;  %v2298_v15 = vld [vmem:[%s3529_s1 + $0x430] ss:$8 sps:$4 sm:$0xff]   ;;  %v2301_v17 = vld [vmem:[%s3529_s1 + $0x444] ss:$8 sps:$4 sm:$0xff]  }
   0x7   :  { %1629 = vmatpush1.bf16.msra.mxu1 %v2285_v6  ;;  %v2303_v18 = vld [vmem:[%s3529_s1 + $0x40] ss:$8 sps:$4 sm:$0xff]   ;;  %v2305_v20 = vld [vmem:[%s3529_s1 + $0x54] ss:$8 sps:$4 sm:$0xff]   ;;  %v2309_v22 = vld [vmem:[%s3529_s1 + $0x50] ss:$8 sps:$4 sm:$0xff]  }
   0x8   :  { %1793 = vmatpush1.bf16.msra.mxu0 %v2286_v7  ;;  %1630 = vmatprep.subr.bf16.mxu1 %v2287_v8  ;;  %v2304_v19 = vld [vmem:[%s3529_s1 + $0x440] ss:$8 sps:$4 sm:$0xff]   ;;  %v2307_v21 = vld [vmem:[%s3529_s1 + $0x454] ss:$8 sps:$4 sm:$0xff]   ;;  %v2310_v23 = vld [vmem:[%s3529_s1 + $0x450] ss:$8 sps:$4 sm:$0xff]  }
   0x9   :  { %1794 = vmatprep.subr.bf16.mxu0 %v2289_v9  ;;  %v2311_v24 = vld [vmem:[%s3529_s1 + $0x64] ss:$8 sps:$4 sm:$0xff]   ;;  %v2315_v26 = vld [vmem:[%s3529_s1 + $0x60] ss:$8 sps:$4 sm:$0xff]   ;;  %v2317_v28 = vld [vmem:[%s3529_s1 + $0x74] ss:$8 sps:$4 sm:$0xff]  }
   0xa   :  { %v2313_v25 = vld [vmem:[%s3529_s1 + $0x464] ss:$8 sps:$4 sm:$0xff]   ;;  %v2316_v27 = vld [vmem:[%s3529_s1 + $0x460] ss:$8 sps:$4 sm:$0xff]   ;;  %v2319_v29 = vld [vmem:[%s3529_s1 + $0x474] ss:$8 sps:$4 sm:$0xff]  }
   0xb   :  { %1631 = vmatpush1.bf16.msra.mxu1 %v2291_v10  ;;  %v2321_v30 = vld [vmem:[%s3529_s1 + $0x70] ss:$8 sps:$4 sm:$0xff]   ;;  %v2323_v32 = vld [vmem:[%s3529_s1 + $0x84] ss:$8 sps:$4 sm:$0xff]   ;;  %v2327_v34 = vld [vmem:[%s3529_s1 + $0x80] ss:$8 sps:$4 sm:$0xff]  }
   0xc   :  { %1795 = vmatpush1.bf16.msra.mxu0 %v2292_v11  ;;  %1632 = vmatprep.subr.bf16.mxu1 %v2293_v12  ;;  %v2322_v31 = vld [vmem:[%s3529_s1 + $0x470] ss:$8 sps:$4 sm:$0xff]   ;;  %v2325_v33 = vld [vmem:[%s3529_s1 + $0x484] ss:$8 sps:$4 sm:$0xff]   ;;  %v2328_v35 = vld [vmem:[%s3529_s1 + $0x480] ss:$8 sps:$4 sm:$0xff]  }
   0xd   :  { %1796 = vmatprep.subr.bf16.mxu0 %v2295_v13  ;;  %v2329_v36 = vld [vmem:[%s3529_s1 + $0x94] ss:$8 sps:$4 sm:$0xff]   ;;  %v2333_v38 = vld [vmem:[%s3529_s1 + $0x90] ss:$8 sps:$4 sm:$0xff]   ;;  %v2335_v40 = vld [vmem:[%s3529_s1 + $0xa4] ss:$8 sps:$4 sm:$0xff]  }
   0xe   :  { %v2331_v37 = vld [vmem:[%s3529_s1 + $0x494] ss:$8 sps:$4 sm:$0xff]   ;;  %v2334_v39 = vld [vmem:[%s3529_s1 + $0x490] ss:$8 sps:$4 sm:$0xff]   ;;  %v2337_v41 = vld [vmem:[%s3529_s1 + $0x4a4] ss:$8 sps:$4 sm:$0xff]  }
   0xf   :  { %1633 = vmatpush1.bf16.msra.mxu1 %v2297_v14  ;;  %v2339_v42 = vld [vmem:[%s3529_s1 + $0xa0] ss:$8 sps:$4 sm:$0xff]   ;;  %v2341_v44 = vld [vmem:[%s3529_s1 + $0xb4] ss:$8 sps:$4 sm:$0xff]   ;;  %v2345_v47 = vld [vmem:[%s3529_s1 + $0xb0] ss:$8 sps:$4 sm:$0xff]  }
  0x10   :  { %1797 = vmatpush1.bf16.msra.mxu0 %v2298_v15  ;;  %1634 = vmatprep.subr.bf16.mxu1 %v2299_v16  ;;  %v2340_v43 = vld [vmem:[%s3529_s1 + $0x4a0] ss:$8 sps:$4 sm:$0xff]   ;;  %v2343_v45 = vld [vmem:[%s3529_s1 + $0x4b4] ss:$8 sps:$4 sm:$0xff]   ;;  %v2346_v49 = vld [vmem:[%s3529_s1 + $0x4b0] ss:$8 sps:$4 sm:$0xff]  }
  0x11   :  { %1798 = vmatprep.subr.bf16.mxu0 %v2301_v17  ;;  %v14_v46 = vld [vmem:[%s3530_s0] sm:$0xff]  ;;  %v2353_v56 = vld [vmem:[%s3529_s1 + $0xd4] ss:$8 sps:$4 sm:$0xff]   ;;  %v2357_v58 = vld [vmem:[%s3529_s1 + $0xd0] ss:$8 sps:$4 sm:$0xff]  }
  0x12   :  { %v1974_v48 = vcombine.high %v14_v46, %v14_v46  ;;  %v18_v50 = vld [vmem:[%s3530_s0 + $0x20] sm:$0xff]  ;;  %v2355_v57 = vld [vmem:[%s3529_s1 + $0x4d4] ss:$8 sps:$4 sm:$0xff]   ;;  %v2358_v59 = vld [vmem:[%s3529_s1 + $0x4d0] ss:$8 sps:$4 sm:$0xff]   ;;  %v1973_v6 = vcombine.low %v14_v46, %v14_v46 }
  0x13   :  { %1635 = vmatpush1.bf16.msra.mxu1 %v2303_v18  ;;  %v2347_v51 = vld [vmem:[%s3529_s1 + $0xc4] ss:$8 sps:$4 sm:$0xff]   ;;  %v1982_v53 = vcombine.high %v18_v50, %v18_v50  ;;  %v2351_v54 = vld [vmem:[%s3529_s1 + $0xc0] ss:$8 sps:$4 sm:$0xff]   ;;  %v2365_v0 = vld [vmem:[%s3529_s1 + $0xf4] ss:$8 sps:$4 sm:$0xff]   ;;  %v1981_v7 = vcombine.low %v18_v50, %v18_v50 }
  0x14   :  { %1799 = vmatpush1.bf16.msra.mxu0 %v2304_v19  ;;  %1636 = vmatprep.subr.bf16.mxu1 %v2305_v20  ;;  %v2349_v52 = vld [vmem:[%s3529_s1 + $0x4c4] ss:$8 sps:$4 sm:$0xff]   ;;  %v2352_v55 = vld [vmem:[%s3529_s1 + $0x4c0] ss:$8 sps:$4 sm:$0xff]   ;;  %v2367_v1 = vld [vmem:[%s3529_s1 + $0x4f4] ss:$8 sps:$4 sm:$0xff]  }
  0x15   :  { %1800 = vmatprep.subr.bf16.mxu0 %v2307_v21  ;;  %1658 = vmatprep.mubr.bf16.mxu1 %v1974_v48  ;;  %v2359_v60 = vld [vmem:[%s3529_s1 + $0xe4] ss:$8 sps:$4 sm:$0xff]   ;;  %v2363_v62 = vld [vmem:[%s3529_s1 + $0xe0] ss:$8 sps:$4 sm:$0xff]   ;;  %v2369_v2 = vld [vmem:[%s3529_s1 + $0xf0] ss:$8 sps:$4 sm:$0xff]  }
  0x16   :  { %1822 = vmatprep.mubr.bf16.mxu0 %v1982_v53  ;;  %v2361_v61 = vld [vmem:[%s3529_s1 + $0x4e4] ss:$8 sps:$4 sm:$0xff]   ;;  %v2364_v63 = vld [vmem:[%s3529_s1 + $0x4e0] ss:$8 sps:$4 sm:$0xff]   ;;  %v2370_v3 = vld [vmem:[%s3529_s1 + $0x4f0] ss:$8 sps:$4 sm:$0xff]  }
  0x17   :  { %1637 = vmatpush1.bf16.msra.mxu1 %v2309_v22  ;;  %v2375_v4 = vld [vmem:[%s3529_s1 + $0x104] ss:$8 sps:$4 sm:$0xff]   ;;  %v2373_v8 = vld [vmem:[%s3529_s1 + $0x100] ss:$8 sps:$4 sm:$0xff]   ;;  %v2383_v10 = vld [vmem:[%s3529_s1 + $0x114] ss:$8 sps:$4 sm:$0xff]  }
  0x18   :  { %1801 = vmatpush1.bf16.msra.mxu0 %v2310_v23  ;;  %1638 = vmatprep.subr.bf16.mxu1 %v2311_v24  ;;  %v2380_v5 = vld [vmem:[%s3529_s1 + $0x504] ss:$8 sps:$4 sm:$0xff]   ;;  %v2378_v9 = vld [vmem:[%s3529_s1 + $0x500] ss:$8 sps:$4 sm:$0xff]   ;;  %v2386_v11 = vld [vmem:[%s3529_s1 + $0x514] ss:$8 sps:$4 sm:$0xff]  }
  0x19   :  { %1802 = vmatprep.subr.bf16.mxu0 %v2313_v25  ;;  %v2381_v12 = vld [vmem:[%s3529_s1 + $0x110] ss:$8 sps:$4 sm:$0xff]   ;;  %v2389_v14 = vld [vmem:[%s3529_s1 + $0x124] ss:$8 sps:$4 sm:$0xff]   ;;  %v2387_v16 = vld [vmem:[%s3529_s1 + $0x120] ss:$8 sps:$4 sm:$0xff]  }
  0x1a   :  { %v2384_v13 = vld [vmem:[%s3529_s1 + $0x510] ss:$8 sps:$4 sm:$0xff]   ;;  %v2392_v15 = vld [vmem:[%s3529_s1 + $0x524] ss:$8 sps:$4 sm:$0xff]   ;;  %v2390_v17 = vld [vmem:[%s3529_s1 + $0x520] ss:$8 sps:$4 sm:$0xff]  }
  0x1b   :  { %1639 = vmatpush1.bf16.msra.mxu1 %v2315_v26  ;;  %v2395_v18 = vld [vmem:[%s3529_s1 + $0x134] ss:$8 sps:$4 sm:$0xff]   ;;  %v2393_v20 = vld [vmem:[%s3529_s1 + $0x130] ss:$8 sps:$4 sm:$0xff]   ;;  %v2401_v22 = vld [vmem:[%s3529_s1 + $0x144] ss:$8 sps:$4 sm:$0xff]  }
  0x1c   :  { %1803 = vmatpush1.bf16.msra.mxu0 %v2316_v27  ;;  %1640 = vmatprep.subr.bf16.mxu1 %v2317_v28  ;;  %v2398_v19 = vld [vmem:[%s3529_s1 + $0x534] ss:$8 sps:$4 sm:$0xff]   ;;  %v2396_v21 = vld [vmem:[%s3529_s1 + $0x530] ss:$8 sps:$4 sm:$0xff]   ;;  %v2404_v23 = vld [vmem:[%s3529_s1 + $0x544] ss:$8 sps:$4 sm:$0xff]  }
  0x1d   :  { %1804 = vmatprep.subr.bf16.mxu0 %v2319_v29  ;;  %v2399_v24 = vld [vmem:[%s3529_s1 + $0x140] ss:$8 sps:$4 sm:$0xff]   ;;  %v2407_v26 = vld [vmem:[%s3529_s1 + $0x154] ss:$8 sps:$4 sm:$0xff]   ;;  %v2405_v28 = vld [vmem:[%s3529_s1 + $0x150] ss:$8 sps:$4 sm:$0xff]  }
  0x1e   :  { %v2402_v25 = vld [vmem:[%s3529_s1 + $0x540] ss:$8 sps:$4 sm:$0xff]   ;;  %v2410_v27 = vld [vmem:[%s3529_s1 + $0x554] ss:$8 sps:$4 sm:$0xff]   ;;  %v2408_v29 = vld [vmem:[%s3529_s1 + $0x550] ss:$8 sps:$4 sm:$0xff]  }
  0x1f   :  { %1641 = vmatpush1.bf16.msra.mxu1 %v2321_v30  ;;  %v2413_v30 = vld [vmem:[%s3529_s1 + $0x164] ss:$8 sps:$4 sm:$0xff]   ;;  %v2431_v46 = vld [vmem:[%s3529_s1 + $0x194] ss:$8 sps:$4 sm:$0xff]   ;;  %v2429_v48 = vld [vmem:[%s3529_s1 + $0x190] ss:$8 sps:$4 sm:$0xff]  }
  0x20   :  { %1805 = vmatpush1.bf16.msra.mxu0 %v2322_v31  ;;  %1642 = vmatprep.subr.bf16.mxu1 %v2323_v32  ;;  %v2416_v31 = vld [vmem:[%s3529_s1 + $0x564] ss:$8 sps:$4 sm:$0xff]   ;;  %v2438_v53 = vld [vmem:[%s3529_s1 + $0x5a0] ss:$8 sps:$4 sm:$0xff]  }
  0x21   :  { %1806 = vmatprep.subr.bf16.mxu0 %v2325_v33  ;;  %v2974_v32 = vld [vmem:[%s3530_s0 + $0x8] sm:$0xff] }
  0x22   :  { %v2411_v33 = vld [vmem:[%s3529_s1 + $0x160] ss:$8 sps:$4 sm:$0xff]   ;;  %v2437_v50 = vld [vmem:[%s3529_s1 + $0x1a4] ss:$8 sps:$4 sm:$0xff]  }
  0x23   :  { %1643 = vmatpush1.bf16.msra.mxu1 %v2327_v34  ;;  %v2414_v34 = vld [vmem:[%s3529_s1 + $0x560] ss:$8 sps:$4 sm:$0xff]  }
  0x24   :  { %1807 = vmatpush1.bf16.msra.mxu0 %v2328_v35  ;;  %1644 = vmatprep.subr.bf16.mxu1 %v2329_v36  ;;  %v1976_v35 = vcombine.high %v2974_v32, %v2974_v32  ;;  %v2987_v36 = vld [vmem:[%s3530_s0 + $0x28] sm:$0xff] }
  0x25   :  { %1808 = vmatprep.subr.bf16.mxu0 %v2331_v37  ;;  %v2419_v37 = vld [vmem:[%s3529_s1 + $0x174] ss:$8 sps:$4 sm:$0xff]  }
  0x27   :  { %1645 = vmatpush1.bf16.msra.mxu1 %v2333_v38  ;;  %v1984_v38 = vcombine.high %v2987_v36, %v2987_v36 }
  0x28   :  { %1809 = vmatpush1.bf16.msra.mxu0 %v2334_v39  ;;  %1646 = vmatprep.subr.bf16.mxu1 %v2335_v40  ;;  %v2422_v39 = vld [vmem:[%s3529_s1 + $0x574] ss:$8 sps:$4 sm:$0xff]   ;;  %v2417_v40 = vld [vmem:[%s3529_s1 + $0x170] ss:$8 sps:$4 sm:$0xff]  }
  0x29   :  { %1810 = vmatprep.subr.bf16.mxu0 %v2337_v41  ;;  %v2420_v41 = vld [vmem:[%s3529_s1 + $0x570] ss:$8 sps:$4 sm:$0xff]  }
  0x2b   :  { %1647 = vmatpush1.bf16.msra.mxu1 %v2339_v42  ;;  %v2425_v42 = vld [vmem:[%s3529_s1 + $0x184] ss:$8 sps:$4 sm:$0xff]  }
  0x2c   :  { %1811 = vmatpush1.bf16.msra.mxu0 %v2340_v43  ;;  %1648 = vmatprep.subr.bf16.mxu1 %v2341_v44  ;;  %v2428_v43 = vld [vmem:[%s3529_s1 + $0x584] ss:$8 sps:$4 sm:$0xff]   ;;  %v2423_v44 = vld [vmem:[%s3529_s1 + $0x180] ss:$8 sps:$4 sm:$0xff]  }
  0x2d   :  { %1812 = vmatprep.subr.bf16.mxu0 %v2343_v45  ;;  %v2426_v45 = vld [vmem:[%s3529_s1 + $0x580] ss:$8 sps:$4 sm:$0xff]  }
  0x2f   :  { %1649 = vmatpush1.bf16.msra.mxu1 %v2345_v47  ;;  %v2434_v47 = vld [vmem:[%s3529_s1 + $0x594] ss:$8 sps:$4 sm:$0xff]  }
  0x30   :  { %1813 = vmatpush1.bf16.msra.mxu0 %v2346_v49  ;;  %1650 = vmatprep.subr.bf16.mxu1 %v2347_v51  ;;  %v2432_v49 = vld [vmem:[%s3529_s1 + $0x590] ss:$8 sps:$4 sm:$0xff]   ;;  %v2440_v51 = vld [vmem:[%s3529_s1 + $0x5a4] ss:$8 sps:$4 sm:$0xff]  }
  0x31   :  { %1814 = vmatprep.subr.bf16.mxu0 %v2349_v52  ;;  %v2435_v52 = vld [vmem:[%s3529_s1 + $0x1a0] ss:$8 sps:$4 sm:$0xff]  }
  0x33   :  { %1651 = vmatpush1.bf16.msra.mxu1 %v2351_v54  ;;  %v2443_v54 = vld [vmem:[%s3529_s1 + $0x1b4] ss:$8 sps:$4 sm:$0xff]  }
  0x34   :  { %1815 = vmatpush1.bf16.msra.mxu0 %v2352_v55  ;;  %1652 = vmatprep.subr.bf16.mxu1 %v2353_v56  ;;  %v2446_v55 = vld [vmem:[%s3529_s1 + $0x5b4] ss:$8 sps:$4 sm:$0xff]   ;;  %v2441_v56 = vld [vmem:[%s3529_s1 + $0x1b0] ss:$8 sps:$4 sm:$0xff]  }
  0x35   :  { %1816 = vmatprep.subr.bf16.mxu0 %v2355_v57  ;;  %v2444_v57 = vld [vmem:[%s3529_s1 + $0x5b0] ss:$8 sps:$4 sm:$0xff]  }
  0x37   :  { %1653 = vmatpush1.bf16.msra.mxu1 %v2357_v58  ;;  %v2449_v58 = vld [vmem:[%s3529_s1 + $0x1c4] ss:$8 sps:$4 sm:$0xff]  }
  0x38   :  { %1817 = vmatpush1.bf16.msra.mxu0 %v2358_v59  ;;  %1654 = vmatprep.subr.bf16.mxu1 %v2359_v60  ;;  %v2452_v59 = vld [vmem:[%s3529_s1 + $0x5c4] ss:$8 sps:$4 sm:$0xff]   ;;  %v2447_v60 = vld [vmem:[%s3529_s1 + $0x1c0] ss:$8 sps:$4 sm:$0xff]  }
  0x39   :  { %1818 = vmatprep.subr.bf16.mxu0 %v2361_v61  ;;  %v2450_v61 = vld [vmem:[%s3529_s1 + $0x5c0] ss:$8 sps:$4 sm:$0xff]  }
  0x3b   :  { %1655 = vmatpush1.bf16.msra.mxu1 %v2363_v62  ;;  %v2455_v62 = vld [vmem:[%s3529_s1 + $0x1d4] ss:$8 sps:$4 sm:$0xff]  }
  0x3c   :  { %1819 = vmatpush1.bf16.msra.mxu0 %v2364_v63  ;;  %1656 = vmatprep.subr.bf16.mxu1 %v2365_v0  ;;  %v2458_v63 = vld [vmem:[%s3529_s1 + $0x5d4] ss:$8 sps:$4 sm:$0xff]   ;;  %v2453_v0 = vld [vmem:[%s3529_s1 + $0x1d0] ss:$8 sps:$4 sm:$0xff]  }
  0x3d   :  { %1820 = vmatprep.subr.bf16.mxu0 %v2367_v1  ;;  %v2456_v1 = vld [vmem:[%s3529_s1 + $0x5d0] ss:$8 sps:$4 sm:$0xff]  }
  0x3f   :  { %1657 = vmatpush1.bf16.msra.mxu1 %v2369_v2  ;;  %v2461_v2 = vld [vmem:[%s3529_s1 + $0x1e4] ss:$8 sps:$4 sm:$0xff]  }
  0x40   :  { %1821 = vmatpush1.bf16.msra.mxu0 %v2370_v3  ;;  %1667 = vmatprep.subr.bf16.mxu1 %v2375_v4  ;;  %v2464_v3 = vld [vmem:[%s3529_s1 + $0x5e4] ss:$8 sps:$4 sm:$0xff]   ;;  %v2459_v4 = vld [vmem:[%s3529_s1 + $0x1e0] ss:$8 sps:$4 sm:$0xff]  }
  0x41   :  { %1831 = vmatprep.subr.bf16.mxu0 %v2380_v5  ;;  %v2462_v5 = vld [vmem:[%s3529_s1 + $0x5e0] ss:$8 sps:$4 sm:$0xff]  }
  0x42   :  { %1659 = vmatmul.mubr.bf16.vlgmr.msra.gmra.mrb[0].mxu1 %v1973_v6  ;;  %v2467_v6 = vld [vmem:[%s3529_s1 + $0x1f4] ss:$8 sps:$4 sm:$0xff]  }
  0x43   :  { %1823 = vmatmul.mubr.bf16.vlgmr.msra.gmra.mrb[0].mxu0 %v1981_v7  ;;  %1668 = vmatpush1.bf16.msra.mxu1 %v2373_v8  ;;  %v2470_v7 = vld [vmem:[%s3529_s1 + $0x5f4] ss:$8 sps:$4 sm:$0xff]   ;;  %v2465_v8 = vld [vmem:[%s3529_s1 + $0x1f0] ss:$8 sps:$4 sm:$0xff]  }
  0x44   :  { %1832 = vmatpush1.bf16.msra.mxu0 %v2378_v9  ;;  %1669 = vmatprep.subr.bf16.mxu1 %v2383_v10  ;;  %v2468_v9 = vld [vmem:[%s3529_s1 + $0x5f0] ss:$8 sps:$4 sm:$0xff]   ;;  %v2475_v10 = vld [vmem:[%s3529_s1 + $0x204] ss:$8 sps:$4 sm:$0xff]  }
  0x45   :  { %1833 = vmatprep.subr.bf16.mxu0 %v2386_v11  ;;  %1699 = vmatprep.mubr.bf16.mxu1 %v1976_v35  ;;  %v2480_v11 = vld [vmem:[%s3529_s1 + $0x604] ss:$8 sps:$4 sm:$0xff]   ;;  %v2502_v35 = vld [vmem:[%s3529_s1 + $0x640] ss:$8 sps:$4 sm:$0xff]  }
  0x46   :  { %1863 = vmatprep.mubr.bf16.mxu0 %v1984_v38  ;;  %v2505_v38 = vld [vmem:[%s3529_s1 + $0x250] ss:$8 sps:$4 sm:$0xff]  }
  0x47   :  { %1670 = vmatpush1.bf16.msra.mxu1 %v2381_v12  ;;  %v1975_v12 = vcombine.low %v2974_v32, %v2974_v32  ;;  %v2501_v32 = vld [vmem:[%s3529_s1 + $0x244] ss:$8 sps:$4 sm:$0xff]  }
  0x48   :  { %1834 = vmatpush1.bf16.msra.mxu0 %v2384_v13  ;;  %1671 = vmatprep.subr.bf16.mxu1 %v2389_v14  ;;  %v2473_v13 = vld [vmem:[%s3529_s1 + $0x200] ss:$8 sps:$4 sm:$0xff]   ;;  %v1983_v14 = vcombine.low %v2987_v36, %v2987_v36  ;;  %v2507_v36 = vld [vmem:[%s3529_s1 + $0x254] ss:$8 sps:$4 sm:$0xff]  }
  0x49   :  { %1835 = vmatprep.subr.bf16.mxu0 %v2392_v15  ;;  %v2478_v15 = vld [vmem:[%s3529_s1 + $0x600] ss:$8 sps:$4 sm:$0xff]  }
  0x4b   :  { %1672 = vmatpush1.bf16.msra.mxu1 %v2387_v16  ;;  %v2483_v16 = vld [vmem:[%s3529_s1 + $0x214] ss:$8 sps:$4 sm:$0xff]  }
  0x4c   :  { %1836 = vmatpush1.bf16.msra.mxu0 %v2390_v17  ;;  %1673 = vmatprep.subr.bf16.mxu1 %v2395_v18  ;;  %v2486_v17 = vld [vmem:[%s3529_s1 + $0x614] ss:$8 sps:$4 sm:$0xff]  }
  0x4d   :  { %1837 = vmatprep.subr.bf16.mxu0 %v2398_v19  ;;  %v3124_v18 = vld [vmem:[%s3530_s0 + $0x10] sm:$0xff] }
  0x4e   :  { %v1978_v19 = vcombine.high %v3124_v18, %v3124_v18 }
  0x4f   :  { %1674 = vmatpush1.bf16.msra.mxu1 %v2393_v20  ;;  %v3131_v20 = vld [vmem:[%s3530_s0 + $0x30] sm:$0xff] }
  0x50   :  { %1838 = vmatpush1.bf16.msra.mxu0 %v2396_v21  ;;  %1675 = vmatprep.subr.bf16.mxu1 %v2401_v22  ;;  %v2481_v21 = vld [vmem:[%s3529_s1 + $0x210] ss:$8 sps:$4 sm:$0xff]  }
  0x51   :  { %1839 = vmatprep.subr.bf16.mxu0 %v2404_v23  ;;  %v2484_v22 = vld [vmem:[%s3529_s1 + $0x610] ss:$8 sps:$4 sm:$0xff]   ;;  %v1986_v23 = vcombine.high %v3131_v20, %v3131_v20 }
  0x53   :  { %1676 = vmatpush1.bf16.msra.mxu1 %v2399_v24  ;;  %v2489_v24 = vld [vmem:[%s3529_s1 + $0x224] ss:$8 sps:$4 sm:$0xff]  }
  0x54   :  { %1840 = vmatpush1.bf16.msra.mxu0 %v2402_v25  ;;  %1677 = vmatprep.subr.bf16.mxu1 %v2407_v26  ;;  %v2492_v25 = vld [vmem:[%s3529_s1 + $0x624] ss:$8 sps:$4 sm:$0xff]   ;;  %v2487_v26 = vld [vmem:[%s3529_s1 + $0x220] ss:$8 sps:$4 sm:$0xff]  }
  0x55   :  { %1841 = vmatprep.subr.bf16.mxu0 %v2410_v27  ;;  %v2490_v27 = vld [vmem:[%s3529_s1 + $0x620] ss:$8 sps:$4 sm:$0xff]  }
  0x57   :  { %1678 = vmatpush1.bf16.msra.mxu1 %v2405_v28  ;;  %v2495_v28 = vld [vmem:[%s3529_s1 + $0x234] ss:$8 sps:$4 sm:$0xff]  }
  0x58   :  { %1842 = vmatpush1.bf16.msra.mxu0 %v2408_v29  ;;  %1679 = vmatprep.subr.bf16.mxu1 %v2413_v30  ;;  %v2498_v29 = vld [vmem:[%s3529_s1 + $0x634] ss:$8 sps:$4 sm:$0xff]   ;;  %v2493_v30 = vld [vmem:[%s3529_s1 + $0x230] ss:$8 sps:$4 sm:$0xff]  }
  0x59   :  { %1843 = vmatprep.subr.bf16.mxu0 %v2416_v31  ;;  %v2496_v31 = vld [vmem:[%s3529_s1 + $0x630] ss:$8 sps:$4 sm:$0xff]  }
  0x5b   :  { %1680 = vmatpush1.bf16.msra.mxu1 %v2411_v33  ;;  %v2504_v33 = vld [vmem:[%s3529_s1 + $0x644] ss:$8 sps:$4 sm:$0xff]  }
  0x5c   :  { %1844 = vmatpush1.bf16.msra.mxu0 %v2414_v34  ;;  %1681 = vmatprep.subr.bf16.mxu1 %v2419_v37  ;;  %v2499_v34 = vld [vmem:[%s3529_s1 + $0x240] ss:$8 sps:$4 sm:$0xff]   ;;  %v2510_v37 = vld [vmem:[%s3529_s1 + $0x654] ss:$8 sps:$4 sm:$0xff]  }
  0x5d   :  { %1845 = vmatprep.subr.bf16.mxu0 %v2422_v39  ;;  %v2508_v39 = vld [vmem:[%s3529_s1 + $0x650] ss:$8 sps:$4 sm:$0xff]  }
  0x5f   :  { %1682 = vmatpush1.bf16.msra.mxu1 %v2417_v40  ;;  %v2513_v40 = vld [vmem:[%s3529_s1 + $0x264] ss:$8 sps:$4 sm:$0xff]  }
  0x60   :  { %1846 = vmatpush1.bf16.msra.mxu0 %v2420_v41  ;;  %1683 = vmatprep.subr.bf16.mxu1 %v2425_v42  ;;  %v2516_v41 = vld [vmem:[%s3529_s1 + $0x664] ss:$8 sps:$4 sm:$0xff]   ;;  %v2511_v42 = vld [vmem:[%s3529_s1 + $0x260] ss:$8 sps:$4 sm:$0xff]  }
  0x61   :  { %1847 = vmatprep.subr.bf16.mxu0 %v2428_v43  ;;  %v2514_v43 = vld [vmem:[%s3529_s1 + $0x660] ss:$8 sps:$4 sm:$0xff]  }
  0x63   :  { %1684 = vmatpush1.bf16.msra.mxu1 %v2423_v44  ;;  %v2519_v44 = vld [vmem:[%s3529_s1 + $0x274] ss:$8 sps:$4 sm:$0xff]  }
  0x64   :  { %1848 = vmatpush1.bf16.msra.mxu0 %v2426_v45  ;;  %1685 = vmatprep.subr.bf16.mxu1 %v2431_v46  ;;  %v2522_v45 = vld [vmem:[%s3529_s1 + $0x674] ss:$8 sps:$4 sm:$0xff]   ;;  %v2517_v46 = vld [vmem:[%s3529_s1 + $0x270] ss:$8 sps:$4 sm:$0xff]  }
  0x65   :  { %1849 = vmatprep.subr.bf16.mxu0 %v2434_v47  ;;  %v2520_v47 = vld [vmem:[%s3529_s1 + $0x670] ss:$8 sps:$4 sm:$0xff]  }
  0x67   :  { %1686 = vmatpush1.bf16.msra.mxu1 %v2429_v48  ;;  %v2525_v48 = vld [vmem:[%s3529_s1 + $0x284] ss:$8 sps:$4 sm:$0xff]  }
  0x68   :  { %1850 = vmatpush1.bf16.msra.mxu0 %v2432_v49  ;;  %1687 = vmatprep.subr.bf16.mxu1 %v2437_v50  ;;  %v2528_v49 = vld [vmem:[%s3529_s1 + $0x684] ss:$8 sps:$4 sm:$0xff]   ;;  %v2523_v50 = vld [vmem:[%s3529_s1 + $0x280] ss:$8 sps:$4 sm:$0xff]  }
  0x69   :  { %1851 = vmatprep.subr.bf16.mxu0 %v2440_v51  ;;  %v2526_v51 = vld [vmem:[%s3529_s1 + $0x680] ss:$8 sps:$4 sm:$0xff]  }
  0x6b   :  { %1688 = vmatpush1.bf16.msra.mxu1 %v2435_v52  ;;  %v2531_v52 = vld [vmem:[%s3529_s1 + $0x294] ss:$8 sps:$4 sm:$0xff]  }
  0x6c   :  { %1852 = vmatpush1.bf16.msra.mxu0 %v2438_v53  ;;  %1689 = vmatprep.subr.bf16.mxu1 %v2443_v54  ;;  %v2534_v53 = vld [vmem:[%s3529_s1 + $0x694] ss:$8 sps:$4 sm:$0xff]   ;;  %v2529_v54 = vld [vmem:[%s3529_s1 + $0x290] ss:$8 sps:$4 sm:$0xff]  }
  0x6d   :  { %1853 = vmatprep.subr.bf16.mxu0 %v2446_v55  ;;  %v2532_v55 = vld [vmem:[%s3529_s1 + $0x690] ss:$8 sps:$4 sm:$0xff]  }
  0x6f   :  { %1690 = vmatpush1.bf16.msra.mxu1 %v2441_v56  ;;  %v2537_v56 = vld [vmem:[%s3529_s1 + $0x2a4] ss:$8 sps:$4 sm:$0xff]  }
  0x70   :  { %1854 = vmatpush1.bf16.msra.mxu0 %v2444_v57  ;;  %1691 = vmatprep.subr.bf16.mxu1 %v2449_v58  ;;  %v2540_v57 = vld [vmem:[%s3529_s1 + $0x6a4] ss:$8 sps:$4 sm:$0xff]   ;;  %v2535_v58 = vld [vmem:[%s3529_s1 + $0x2a0] ss:$8 sps:$4 sm:$0xff]  }
  0x71   :  { %1855 = vmatprep.subr.bf16.mxu0 %v2452_v59  ;;  %v2538_v59 = vld [vmem:[%s3529_s1 + $0x6a0] ss:$8 sps:$4 sm:$0xff]  }
  0x73   :  { %1692 = vmatpush1.bf16.msra.mxu1 %v2447_v60  ;;  %v2543_v60 = vld [vmem:[%s3529_s1 + $0x2b4] ss:$8 sps:$4 sm:$0xff]  }
  0x74   :  { %1856 = vmatpush1.bf16.msra.mxu0 %v2450_v61  ;;  %1693 = vmatprep.subr.bf16.mxu1 %v2455_v62  ;;  %v2546_v61 = vld [vmem:[%s3529_s1 + $0x6b4] ss:$8 sps:$4 sm:$0xff]   ;;  %v2541_v62 = vld [vmem:[%s3529_s1 + $0x2b0] ss:$8 sps:$4 sm:$0xff]  }
  0x75   :  { %1857 = vmatprep.subr.bf16.mxu0 %v2458_v63  ;;  %v2544_v63 = vld [vmem:[%s3529_s1 + $0x6b0] ss:$8 sps:$4 sm:$0xff]  }
  0x77   :  { %1694 = vmatpush1.bf16.msra.mxu1 %v2453_v0  ;;  %v2549_v0 = vld [vmem:[%s3529_s1 + $0x2c4] ss:$8 sps:$4 sm:$0xff]  }
  0x78   :  { %1858 = vmatpush1.bf16.msra.mxu0 %v2456_v1  ;;  %1695 = vmatprep.subr.bf16.mxu1 %v2461_v2  ;;  %v2552_v1 = vld [vmem:[%s3529_s1 + $0x6c4] ss:$8 sps:$4 sm:$0xff]   ;;  %v2547_v2 = vld [vmem:[%s3529_s1 + $0x2c0] ss:$8 sps:$4 sm:$0xff]  }
  0x79   :  { %1859 = vmatprep.subr.bf16.mxu0 %v2464_v3  ;;  %v2550_v3 = vld [vmem:[%s3529_s1 + $0x6c0] ss:$8 sps:$4 sm:$0xff]  }
  0x7b   :  { %1696 = vmatpush1.bf16.msra.mxu1 %v2459_v4  ;;  %v2555_v4 = vld [vmem:[%s3529_s1 + $0x2d4] ss:$8 sps:$4 sm:$0xff]  }
  0x7c   :  { %1860 = vmatpush1.bf16.msra.mxu0 %v2462_v5  ;;  %1697 = vmatprep.subr.bf16.mxu1 %v2467_v6  ;;  %v2558_v5 = vld [vmem:[%s3529_s1 + $0x6d4] ss:$8 sps:$4 sm:$0xff]   ;;  %v2553_v6 = vld [vmem:[%s3529_s1 + $0x2d0] ss:$8 sps:$4 sm:$0xff]  }
  0x7d   :  { %1861 = vmatprep.subr.bf16.mxu0 %v2470_v7  ;;  %v2556_v7 = vld [vmem:[%s3529_s1 + $0x6d0] ss:$8 sps:$4 sm:$0xff]  }
  0x7f   :  { %1698 = vmatpush1.bf16.msra.mxu1 %v2465_v8  ;;  %v2561_v8 = vld [vmem:[%s3529_s1 + $0x2e4] ss:$8 sps:$4 sm:$0xff]  }
  0x80   :  { %1862 = vmatpush1.bf16.msra.mxu0 %v2468_v9  ;;  %1708 = vmatprep.subr.bf16.mxu1 %v2475_v10  ;;  %v2564_v9 = vld [vmem:[%s3529_s1 + $0x6e4] ss:$8 sps:$4 sm:$0xff]   ;;  %v2559_v10 = vld [vmem:[%s3529_s1 + $0x2e0] ss:$8 sps:$4 sm:$0xff]  }
  0x81   :  { %1872 = vmatprep.subr.bf16.mxu0 %v2480_v11  ;;  %v2562_v11 = vld [vmem:[%s3529_s1 + $0x6e0] ss:$8 sps:$4 sm:$0xff]  }
  0x82   :  { %1700 = vmatmul.mubr.bf16.vlgmr.msra.gmra.mrb[0].mxu1 %v1975_v12  ;;  %v2567_v12 = vld [vmem:[%s3529_s1 + $0x2f4] ss:$8 sps:$4 sm:$0xff]  }
  0x83   :  { %1864 = vmatmul.mubr.bf16.vlgmr.msra.gmra.mrb[0].mxu0 %v1983_v14  ;;  %1709 = vmatpush1.bf16.msra.mxu1 %v2473_v13  ;;  %v2570_v13 = vld [vmem:[%s3529_s1 + $0x6f4] ss:$8 sps:$4 sm:$0xff]   ;;  %v2565_v14 = vld [vmem:[%s3529_s1 + $0x2f0] ss:$8 sps:$4 sm:$0xff]  }
  0x84   :  { %1873 = vmatpush1.bf16.msra.mxu0 %v2478_v15  ;;  %1710 = vmatprep.subr.bf16.mxu1 %v2483_v16  ;;  %v2568_v15 = vld [vmem:[%s3529_s1 + $0x6f0] ss:$8 sps:$4 sm:$0xff]   ;;  %v2575_v16 = vld [vmem:[%s3529_s1 + $0x304] ss:$8 sps:$4 sm:$0xff]  }
  0x85   :  { %1874 = vmatprep.subr.bf16.mxu0 %v2486_v17  ;;  %1740 = vmatprep.mubr.bf16.mxu1 %v1978_v19  ;;  %v2580_v17 = vld [vmem:[%s3529_s1 + $0x704] ss:$8 sps:$4 sm:$0xff]   ;;  %v1977_v19 = vcombine.low %v3124_v18, %v3124_v18  ;;  %v2578_v18 = vld [vmem:[%s3529_s1 + $0x700] ss:$8 sps:$4 sm:$0xff]  }
  0x86   :  { %1904 = vmatprep.mubr.bf16.mxu0 %v1986_v23  ;;  %v3327_v23 = vld [vmem:[%s3530_s0 + $0x38] sm:$0xff] }
  0x87   :  { %1711 = vmatpush1.bf16.msra.mxu1 %v2481_v21  ;;  %v1985_v21 = vcombine.low %v3131_v20, %v3131_v20  ;;  %v2583_v20 = vld [vmem:[%s3529_s1 + $0x314] ss:$8 sps:$4 sm:$0xff]  }
  0x88   :  { %1875 = vmatpush1.bf16.msra.mxu0 %v2484_v22  ;;  %1712 = vmatprep.subr.bf16.mxu1 %v2489_v24  ;;  %v3322_v22 = vld [vmem:[%s3530_s0 + $0x18] sm:$0xff]  ;;  %v2573_v24 = vld [vmem:[%s3529_s1 + $0x300] ss:$8 sps:$4 sm:$0xff]  }
  0x89   :  { %1876 = vmatprep.subr.bf16.mxu0 %v2492_v25  ;;  %v2586_v25 = vld [vmem:[%s3529_s1 + $0x714] ss:$8 sps:$4 sm:$0xff]  }
  0x8b   :  { %1713 = vmatpush1.bf16.msra.mxu1 %v2487_v26  ;;  %v1980_v26 = vcombine.high %v3322_v22, %v3322_v22 }
  0x8c   :  { %1877 = vmatpush1.bf16.msra.mxu0 %v2490_v27  ;;  %1714 = vmatprep.subr.bf16.mxu1 %v2495_v28  ;;  %v1988_v27 = vcombine.high %v3327_v23, %v3327_v23  ;;  %v2581_v28 = vld [vmem:[%s3529_s1 + $0x310] ss:$8 sps:$4 sm:$0xff]  }
  0x8d   :  { %1878 = vmatprep.subr.bf16.mxu0 %v2498_v29  ;;  %v2584_v29 = vld [vmem:[%s3529_s1 + $0x710] ss:$8 sps:$4 sm:$0xff]  }
  0x8f   :  { %1715 = vmatpush1.bf16.msra.mxu1 %v2493_v30  ;;  %v2589_v30 = vld [vmem:[%s3529_s1 + $0x324] ss:$8 sps:$4 sm:$0xff]  }
  0x90   :  { %1879 = vmatpush1.bf16.msra.mxu0 %v2496_v31  ;;  %1716 = vmatprep.subr.bf16.mxu1 %v2501_v32  ;;  %v2592_v31 = vld [vmem:[%s3529_s1 + $0x724] ss:$8 sps:$4 sm:$0xff]   ;;  %v2587_v32 = vld [vmem:[%s3529_s1 + $0x320] ss:$8 sps:$4 sm:$0xff]  }
  0x91   :  { %1880 = vmatprep.subr.bf16.mxu0 %v2504_v33  ;;  %v2590_v33 = vld [vmem:[%s3529_s1 + $0x720] ss:$8 sps:$4 sm:$0xff]  }
  0x93   :  { %1717 = vmatpush1.bf16.msra.mxu1 %v2499_v34  ;;  %v2595_v34 = vld [vmem:[%s3529_s1 + $0x334] ss:$8 sps:$4 sm:$0xff]  }
  0x94   :  { %1881 = vmatpush1.bf16.msra.mxu0 %v2502_v35  ;;  %1718 = vmatprep.subr.bf16.mxu1 %v2507_v36  ;;  %v2598_v35 = vld [vmem:[%s3529_s1 + $0x734] ss:$8 sps:$4 sm:$0xff]   ;;  %v2593_v36 = vld [vmem:[%s3529_s1 + $0x330] ss:$8 sps:$4 sm:$0xff]  }
  0x95   :  { %1882 = vmatprep.subr.bf16.mxu0 %v2510_v37  ;;  %v2596_v37 = vld [vmem:[%s3529_s1 + $0x730] ss:$8 sps:$4 sm:$0xff]  }
  0x97   :  { %1719 = vmatpush1.bf16.msra.mxu1 %v2505_v38  ;;  %v2601_v38 = vld [vmem:[%s3529_s1 + $0x344] ss:$8 sps:$4 sm:$0xff]  }
  0x98   :  { %1883 = vmatpush1.bf16.msra.mxu0 %v2508_v39  ;;  %1720 = vmatprep.subr.bf16.mxu1 %v2513_v40  ;;  %v2604_v39 = vld [vmem:[%s3529_s1 + $0x744] ss:$8 sps:$4 sm:$0xff]   ;;  %v2599_v40 = vld [vmem:[%s3529_s1 + $0x340] ss:$8 sps:$4 sm:$0xff]  }
  0x99   :  { %1884 = vmatprep.subr.bf16.mxu0 %v2516_v41  ;;  %v2602_v41 = vld [vmem:[%s3529_s1 + $0x740] ss:$8 sps:$4 sm:$0xff]  }
  0x9b   :  { %1721 = vmatpush1.bf16.msra.mxu1 %v2511_v42  ;;  %v2607_v42 = vld [vmem:[%s3529_s1 + $0x354] ss:$8 sps:$4 sm:$0xff]  }
  0x9c   :  { %1885 = vmatpush1.bf16.msra.mxu0 %v2514_v43  ;;  %1722 = vmatprep.subr.bf16.mxu1 %v2519_v44  ;;  %v2610_v43 = vld [vmem:[%s3529_s1 + $0x754] ss:$8 sps:$4 sm:$0xff]   ;;  %v2605_v44 = vld [vmem:[%s3529_s1 + $0x350] ss:$8 sps:$4 sm:$0xff]  }
  0x9d   :  { %1886 = vmatprep.subr.bf16.mxu0 %v2522_v45  ;;  %v2608_v45 = vld [vmem:[%s3529_s1 + $0x750] ss:$8 sps:$4 sm:$0xff]  }
  0x9f   :  { %1723 = vmatpush1.bf16.msra.mxu1 %v2517_v46  ;;  %v2613_v46 = vld [vmem:[%s3529_s1 + $0x364] ss:$8 sps:$4 sm:$0xff]  }
  0xa0   :  { %1887 = vmatpush1.bf16.msra.mxu0 %v2520_v47  ;;  %1724 = vmatprep.subr.bf16.mxu1 %v2525_v48  ;;  %v2616_v47 = vld [vmem:[%s3529_s1 + $0x764] ss:$8 sps:$4 sm:$0xff]   ;;  %v2611_v48 = vld [vmem:[%s3529_s1 + $0x360] ss:$8 sps:$4 sm:$0xff]  }
  0xa1   :  { %1888 = vmatprep.subr.bf16.mxu0 %v2528_v49  ;;  %v2614_v49 = vld [vmem:[%s3529_s1 + $0x760] ss:$8 sps:$4 sm:$0xff]  }
  0xa3   :  { %1725 = vmatpush1.bf16.msra.mxu1 %v2523_v50  ;;  %v2619_v50 = vld [vmem:[%s3529_s1 + $0x374] ss:$8 sps:$4 sm:$0xff]  }
  0xa4   :  { %1889 = vmatpush1.bf16.msra.mxu0 %v2526_v51  ;;  %1726 = vmatprep.subr.bf16.mxu1 %v2531_v52  ;;  %v2622_v51 = vld [vmem:[%s3529_s1 + $0x774] ss:$8 sps:$4 sm:$0xff]   ;;  %v2617_v52 = vld [vmem:[%s3529_s1 + $0x370] ss:$8 sps:$4 sm:$0xff]  }
  0xa5   :  { %1890 = vmatprep.subr.bf16.mxu0 %v2534_v53  ;;  %v2620_v53 = vld [vmem:[%s3529_s1 + $0x770] ss:$8 sps:$4 sm:$0xff]  }
  0xa7   :  { %1727 = vmatpush1.bf16.msra.mxu1 %v2529_v54  ;;  %v2625_v54 = vld [vmem:[%s3529_s1 + $0x384] ss:$8 sps:$4 sm:$0xff]  }
  0xa8   :  { %1891 = vmatpush1.bf16.msra.mxu0 %v2532_v55  ;;  %1728 = vmatprep.subr.bf16.mxu1 %v2537_v56  ;;  %v2628_v55 = vld [vmem:[%s3529_s1 + $0x784] ss:$8 sps:$4 sm:$0xff]   ;;  %v2623_v56 = vld [vmem:[%s3529_s1 + $0x380] ss:$8 sps:$4 sm:$0xff]  }
  0xa9   :  { %1892 = vmatprep.subr.bf16.mxu0 %v2540_v57  ;;  %v2626_v57 = vld [vmem:[%s3529_s1 + $0x780] ss:$8 sps:$4 sm:$0xff]  }
  0xab   :  { %1729 = vmatpush1.bf16.msra.mxu1 %v2535_v58  ;;  %v2631_v58 = vld [vmem:[%s3529_s1 + $0x394] ss:$8 sps:$4 sm:$0xff]  }
  0xac   :  { %1893 = vmatpush1.bf16.msra.mxu0 %v2538_v59  ;;  %1730 = vmatprep.subr.bf16.mxu1 %v2543_v60  ;;  %v2634_v59 = vld [vmem:[%s3529_s1 + $0x794] ss:$8 sps:$4 sm:$0xff]   ;;  %v2629_v60 = vld [vmem:[%s3529_s1 + $0x390] ss:$8 sps:$4 sm:$0xff]  }
  0xad   :  { %1894 = vmatprep.subr.bf16.mxu0 %v2546_v61  ;;  %v2632_v61 = vld [vmem:[%s3529_s1 + $0x790] ss:$8 sps:$4 sm:$0xff]  }
  0xaf   :  { %1731 = vmatpush1.bf16.msra.mxu1 %v2541_v62  ;;  %v2637_v62 = vld [vmem:[%s3529_s1 + $0x3a4] ss:$8 sps:$4 sm:$0xff]  }
  0xb0   :  { %1895 = vmatpush1.bf16.msra.mxu0 %v2544_v63  ;;  %1732 = vmatprep.subr.bf16.mxu1 %v2549_v0  ;;  %v2640_v63 = vld [vmem:[%s3529_s1 + $0x7a4] ss:$8 sps:$4 sm:$0xff]   ;;  %v2635_v0 = vld [vmem:[%s3529_s1 + $0x3a0] ss:$8 sps:$4 sm:$0xff]  }
  0xb1   :  { %1896 = vmatprep.subr.bf16.mxu0 %v2552_v1  ;;  %v2638_v1 = vld [vmem:[%s3529_s1 + $0x7a0] ss:$8 sps:$4 sm:$0xff]  }
  0xb3   :  { %1733 = vmatpush1.bf16.msra.mxu1 %v2547_v2  ;;  %v2643_v2 = vld [vmem:[%s3529_s1 + $0x3b4] ss:$8 sps:$4 sm:$0xff]  }
  0xb4   :  { %1897 = vmatpush1.bf16.msra.mxu0 %v2550_v3  ;;  %1734 = vmatprep.subr.bf16.mxu1 %v2555_v4  ;;  %v2646_v3 = vld [vmem:[%s3529_s1 + $0x7b4] ss:$8 sps:$4 sm:$0xff]   ;;  %v2641_v4 = vld [vmem:[%s3529_s1 + $0x3b0] ss:$8 sps:$4 sm:$0xff]  }
  0xb5   :  { %1898 = vmatprep.subr.bf16.mxu0 %v2558_v5  ;;  %v2644_v5 = vld [vmem:[%s3529_s1 + $0x7b0] ss:$8 sps:$4 sm:$0xff]  }
  0xb7   :  { %1735 = vmatpush1.bf16.msra.mxu1 %v2553_v6  ;;  %v2649_v6 = vld [vmem:[%s3529_s1 + $0x3c4] ss:$8 sps:$4 sm:$0xff]  }
  0xb8   :  { %1899 = vmatpush1.bf16.msra.mxu0 %v2556_v7  ;;  %1736 = vmatprep.subr.bf16.mxu1 %v2561_v8  ;;  %v2652_v7 = vld [vmem:[%s3529_s1 + $0x7c4] ss:$8 sps:$4 sm:$0xff]   ;;  %v2647_v8 = vld [vmem:[%s3529_s1 + $0x3c0] ss:$8 sps:$4 sm:$0xff]  }
  0xb9   :  { %1900 = vmatprep.subr.bf16.mxu0 %v2564_v9  ;;  %v2650_v9 = vld [vmem:[%s3529_s1 + $0x7c0] ss:$8 sps:$4 sm:$0xff]  }
  0xbb   :  { %1737 = vmatpush1.bf16.msra.mxu1 %v2559_v10  ;;  %v2655_v10 = vld [vmem:[%s3529_s1 + $0x3d4] ss:$8 sps:$4 sm:$0xff]  }
  0xbc   :  { %1901 = vmatpush1.bf16.msra.mxu0 %v2562_v11  ;;  %1738 = vmatprep.subr.bf16.mxu1 %v2567_v12  ;;  %v2658_v11 = vld [vmem:[%s3529_s1 + $0x7d4] ss:$8 sps:$4 sm:$0xff]   ;;  %v2653_v12 = vld [vmem:[%s3529_s1 + $0x3d0] ss:$8 sps:$4 sm:$0xff]  }
  0xbd   :  { %1902 = vmatprep.subr.bf16.mxu0 %v2570_v13  ;;  %v2656_v13 = vld [vmem:[%s3529_s1 + $0x7d0] ss:$8 sps:$4 sm:$0xff]  }
  0xbf   :  { %1739 = vmatpush1.bf16.msra.mxu1 %v2565_v14  ;;  %v2661_v14 = vld [vmem:[%s3529_s1 + $0x3e4] ss:$8 sps:$4 sm:$0xff]  }
  0xc0   :  { %1903 = vmatpush1.bf16.msra.mxu0 %v2568_v15  ;;  %1749 = vmatprep.subr.bf16.mxu1 %v2575_v16  ;;  %v2664_v15 = vld [vmem:[%s3529_s1 + $0x7e4] ss:$8 sps:$4 sm:$0xff]   ;;  %v2659_v16 = vld [vmem:[%s3529_s1 + $0x3e0] ss:$8 sps:$4 sm:$0xff]  }
  0xc1   :  { %1913 = vmatprep.subr.bf16.mxu0 %v2580_v17  ;;  %v2662_v17 = vld [vmem:[%s3529_s1 + $0x7e0] ss:$8 sps:$4 sm:$0xff]  }
  0xc2   :  { %1741 = vmatmul.mubr.bf16.vlgmr.msra.gmra.mrb[0].mxu1 %v1977_v19  ;;  %v2667_v19 = vld [vmem:[%s3529_s1 + $0x3f4] ss:$8 sps:$4 sm:$0xff]  }
  0xc3   :  { %1905 = vmatmul.mubr.bf16.vlgmr.msra.gmra.mrb[0].mxu0 %v1985_v21  ;;  %1750 = vmatpush1.bf16.msra.mxu1 %v2573_v24  ;;  %v2670_v21 = vld [vmem:[%s3529_s1 + $0x7f4] ss:$8 sps:$4 sm:$0xff]   ;;  %v2665_v24 = vld [vmem:[%s3529_s1 + $0x3f0] ss:$8 sps:$4 sm:$0xff]  }
  0xc4   :  { %1914 = vmatpush1.bf16.msra.mxu0 %v2578_v18  ;;  %1751 = vmatprep.subr.bf16.mxu1 %v2583_v20  ;;  %v2668_v18 = vld [vmem:[%s3529_s1 + $0x7f0] ss:$8 sps:$4 sm:$0xff]   ;;  %v1979_v20 = vcombine.low %v3322_v22, %v3322_v22 }
  0xc5   :  { %1915 = vmatprep.subr.bf16.mxu0 %v2586_v25  ;;  %1781 = vmatprep.mubr.bf16.mxu1 %v1980_v26  ;;  %v1987_v25 = vcombine.low %v3327_v23, %v3327_v23  ;;  %v280_v26 = vlaneseq }
  0xc6   :  { %1945 = vmatprep.mubr.bf16.mxu0 %v1988_v27 }
  0xc7   :  { %1752 = vmatpush1.bf16.msra.mxu1 %v2581_v28  ;;  %v281_v27 = vshrl.u32 %v280_v26, 7 }
  0xc8   :  { %1916 = vmatpush1.bf16.msra.mxu0 %v2584_v29  ;;  %1753 = vmatprep.subr.bf16.mxu1 %v2589_v30  ;;  %v278_v29 = vld [vmem:[%s3531_s2] sm:$0x3] }
  0xc9   :  { %1917 = vmatprep.subr.bf16.mxu0 %v2592_v31  ;;  %v282_v28 = vsub.s32 0, %v281_v27  ;;  %v286_v30 = vsub.s32 1, %v281_v27 }
  0xcb   :  { %1754 = vmatpush1.bf16.msra.mxu1 %v2587_v32  ;;  %v283_v31 = vrot.slane %v278_v29, %v282_v28  ;;  %v287_v32 = vrot.slane %v278_v29, %v286_v30 }
  0xcc   :  { %1918 = vmatpush1.bf16.msra.mxu0 %v2590_v33  ;;  %1755 = vmatprep.subr.bf16.mxu1 %v2595_v34 }
  0xcd   :  { %1919 = vmatprep.subr.bf16.mxu0 %v2598_v35 }
  0xcf   :  { %1756 = vmatpush1.bf16.msra.mxu1 %v2593_v36 }
  0xd0   :  { %1920 = vmatpush1.bf16.msra.mxu0 %v2596_v37  ;;  %1757 = vmatprep.subr.bf16.mxu1 %v2601_v38 }
  0xd1   :  { %1921 = vmatprep.subr.bf16.mxu0 %v2604_v39 }
  0xd3   :  { %1758 = vmatpush1.bf16.msra.mxu1 %v2599_v40 }
  0xd4   :  { %1922 = vmatpush1.bf16.msra.mxu0 %v2602_v41  ;;  %1759 = vmatprep.subr.bf16.mxu1 %v2607_v42 }
  0xd5   :  { %1923 = vmatprep.subr.bf16.mxu0 %v2610_v43 }
  0xd7   :  { %1760 = vmatpush1.bf16.msra.mxu1 %v2605_v44 }
  0xd8   :  { %1924 = vmatpush1.bf16.msra.mxu0 %v2608_v45  ;;  %1761 = vmatprep.subr.bf16.mxu1 %v2613_v46 }
  0xd9   :  { %1925 = vmatprep.subr.bf16.mxu0 %v2616_v47 }
  0xdb   :  { %1762 = vmatpush1.bf16.msra.mxu1 %v2611_v48 }
  0xdc   :  { %1926 = vmatpush1.bf16.msra.mxu0 %v2614_v49  ;;  %1763 = vmatprep.subr.bf16.mxu1 %v2619_v50 }
  0xdd   :  { %1927 = vmatprep.subr.bf16.mxu0 %v2622_v51 }
  0xdf   :  { %1764 = vmatpush1.bf16.msra.mxu1 %v2617_v52 }
  0xe0   :  { %1928 = vmatpush1.bf16.msra.mxu0 %v2620_v53  ;;  %1765 = vmatprep.subr.bf16.mxu1 %v2625_v54 }
  0xe1   :  { %1929 = vmatprep.subr.bf16.mxu0 %v2628_v55 }
  0xe3   :  { %1766 = vmatpush1.bf16.msra.mxu1 %v2623_v56 }
  0xe4   :  { %1930 = vmatpush1.bf16.msra.mxu0 %v2626_v57  ;;  %1767 = vmatprep.subr.bf16.mxu1 %v2631_v58 }
  0xe5   :  { %1931 = vmatprep.subr.bf16.mxu0 %v2634_v59 }
  0xe7   :  { %1768 = vmatpush1.bf16.msra.mxu1 %v2629_v60 }
  0xe8   :  { %1932 = vmatpush1.bf16.msra.mxu0 %v2632_v61  ;;  %1769 = vmatprep.subr.bf16.mxu1 %v2637_v62 }
  0xe9   :  { %1933 = vmatprep.subr.bf16.mxu0 %v2640_v63 }
  0xeb   :  { %1770 = vmatpush1.bf16.msra.mxu1 %v2635_v0 }
  0xec   :  { %1934 = vmatpush1.bf16.msra.mxu0 %v2638_v1  ;;  %1771 = vmatprep.subr.bf16.mxu1 %v2643_v2 }
  0xed   :  { %1935 = vmatprep.subr.bf16.mxu0 %v2646_v3 }
  0xef   :  { %1772 = vmatpush1.bf16.msra.mxu1 %v2641_v4 }
  0xf0   :  { %1936 = vmatpush1.bf16.msra.mxu0 %v2644_v5  ;;  %1773 = vmatprep.subr.bf16.mxu1 %v2649_v6 }
  0xf1   :  { %1937 = vmatprep.subr.bf16.mxu0 %v2652_v7 }
  0xf3   :  { %1774 = vmatpush1.bf16.msra.mxu1 %v2647_v8 }
  0xf4   :  { %1938 = vmatpush1.bf16.msra.mxu0 %v2650_v9  ;;  %1775 = vmatprep.subr.bf16.mxu1 %v2655_v10 }
  0xf5   :  { %1939 = vmatprep.subr.bf16.mxu0 %v2658_v11 }
  0xf7   :  { %1776 = vmatpush1.bf16.msra.mxu1 %v2653_v12 }
  0xf8   :  { %1940 = vmatpush1.bf16.msra.mxu0 %v2656_v13  ;;  %1777 = vmatprep.subr.bf16.mxu1 %v2661_v14 }
  0xf9   :  { %1941 = vmatprep.subr.bf16.mxu0 %v2664_v15 }
  0xfb   :  { %1778 = vmatpush1.bf16.msra.mxu1 %v2659_v16 }
  0xfc   :  { %1942 = vmatpush1.bf16.msra.mxu0 %v2662_v17  ;;  %1779 = vmatprep.subr.bf16.mxu1 %v2667_v19 }
  0xfd   :  { %1943 = vmatprep.subr.bf16.mxu0 %v2670_v21 }
  0xff   :  { %1780 = vmatpush1.bf16.msra.mxu1 %v2665_v24 }
 0x100   :  { %1944 = vmatpush1.bf16.msra.mxu0 %v2668_v18 }
 0x102   :  { %1782 = vmatmul.mubr.bf16.vlgmr.msra.gmra.mrb[0].mxu1 %v1979_v20 }
 0x103   :  { %1946 = vmatmul.mubr.bf16.vlgmr.msra.gmra.mrb[0].mxu0 %v1987_v25 }
 0x1d5   :  { %v1783_v33 = vpop.f32.mrb[0].mxu1 }
 0x1d6   :  { %v1947_v34 = vpop.f32.mrb[0].mxu0  ;;  %v2247_v22 = vadd.f32 %v1783_v33, %v283_v31  ;;  %v1785_v35 = vpop.f32.mrb[1].mxu1 }
 0x1d7   :  { %v1949_v36 = vpop.f32.mrb[1].mxu0  ;;  %v2249_v23 = vadd.f32 %v1785_v35, %v287_v32  ;;  %v1787_v37 = vpop.f32.mrb[2].mxu1 }
 0x1d8   :  { %v1951_v38 = vpop.f32.mrb[2].mxu0  ;;  %v2248_v39 = vadd.f32 %v2247_v22, %v1947_v34  ;;  %v1788_v40 = vpop.f32.mrb[3].mxu1 }
 0x1d9   :  { %v1952_v41 = vpop.f32.mrb[3].mxu0  ;;  %v2250_v42 = vadd.f32 %v2249_v23, %v1949_v36 }
 0x1da   :  { %vm1954_vm0 = vcmp.ge.f32.partialorder %v2248_v39, 0.0  ;;  %v1956_v43 = vmul.f32 0.2, %v2248_v39 }
 0x1db   :  { %vm1955_vm1 = vcmp.ge.f32.partialorder %v2250_v42, 0.0  ;;  %v1957_v44 = vmul.f32 0.2, %v2250_v42 }
 0x1dc   :  { %v1958_v45 = vsel %vm1954_vm0, %v2248_v39, %v1956_v43 }
 0x1dd   :  { %v1959_v46 = vsel %vm1955_vm1, %v2250_v42, %v1957_v44 }
 0x1de   :  { %v2246_v47 = vpack.c.bf16 %v1959_v46, %v1958_v45 }
 0x1e0   :  { %1968 = vst [vmem:[%s3532_s3] sm:$0xff] %v2246_v47 }

// kernel: discriminator_funiegan_pallas.9
= control target key start
LH: loop header
LB: loop body
LE: loop exit
PB: predicated region body
PF: predicated region fallthrough
CT: control target
= control target key end

     0   :  { %v67_v0 = vlaneseq  ;;  %vm292_vm0 = vcmask 7168   ;;  %s424_s0 = inlined_call_operand.vmem [shape: bf16[8,4096], index: 0, kind: input, shape index: {}]   ;;  %s425_s1 = inlined_call_operand.vmem [shape: f32[1,4096], index: 1, kind: input, shape index: {}]   ;;  %s426_s2 = inlined_call_operand.vmem [shape: f32[8,1], index: 2, kind: output, shape index: {}]  }
   0x1   :  { %v11_v2 = vld [vmem:[%s424_s0] sm:$0xff]  ;;  %v12_v7 = vld [vmem:[%s424_s0 + $0x8] sm:$0xff]  ;;  %v13_v16 = vld [vmem:[%s424_s0 + $0x10] sm:$0xff] }
   0x2   :  { %v68_v1 = vshrl.u32 %v67_v0, 7  ;;  %v59_v5 = vld [vmem:[%s425_s1] sm:$0xff]  ;;  %v27_v8 = vunpack.c.l.bf16 %v11_v2  ;;  %v28_v9 = vunpack.c.h.bf16 %v11_v2  ;;  %v29_v13 = vunpack.c.l.bf16 %v12_v7  ;;  %v14_v26 = vld [vmem:[%s424_s0 + $0x18] sm:$0xff]  ;;  %v60_v37 = vld [vmem:[%s425_s1 + $0x8] sm:$0xff] }
   0x3   :  { %v30_v17 = vunpack.c.h.bf16 %v12_v7  ;;  %v31_v22 = vunpack.c.l.bf16 %v13_v16  ;;  %v32_v27 = vunpack.c.h.bf16 %v13_v16  ;;  %v33_v32 = vunpack.c.l.bf16 %v14_v26  ;;  %v15_v36 = vld [vmem:[%s424_s0 + $0x20] sm:$0xff]  ;;  %v16_v46 = vld [vmem:[%s424_s0 + $0x28] sm:$0xff]  ;;  %v17_v55 = vld [vmem:[%s424_s0 + $0x30] sm:$0xff] }
   0x4   :  { %v316_v3 = vsub.s32 0, %v68_v1  ;;  %v318_v4 = vsub.s32 1, %v68_v1  ;;  %v323_v6 = vsub.s32 2, %v68_v1  ;;  %v330_v12 = vsub.s32 3, %v68_v1  ;;  %v18_v0 = vld [vmem:[%s424_s0 + $0x38] sm:$0xff] }
   0x5   :  { %v333_v15 = vsub.s32 4, %v68_v1  ;;  %v339_v19 = vsub.s32 5, %v68_v1  ;;  %v342_v24 = vsub.s32 6, %v68_v1  ;;  %v348_v29 = vsub.s32 7, %v68_v1 }
   0x6   :  { %v70_v10 = vrot.slane %v59_v5, %v316_v3  ;;  %v74_v11 = vrot.slane %v59_v5, %v318_v4  ;;  %v78_v14 = vrot.slane %v59_v5, %v323_v6  ;;  %v82_v18 = vrot.slane %v59_v5, %v330_v12 }
   0x7   :  { %v86_v23 = vrot.slane %v59_v5, %v333_v15  ;;  %v90_v28 = vrot.slane %v59_v5, %v339_v19  ;;  %v94_v33 = vrot.slane %v59_v5, %v342_v24  ;;  %v34_v38 = vunpack.c.h.bf16 %v14_v26  ;;  %v20_v26 = vld [vmem:[%s424_s0 + $0x48] sm:$0xff] }
   0x8   :  { %v227_v20 = vmul.f32 %v70_v10, %v27_v8  ;;  %v228_v21 = vmul.f32 %v74_v11, %v28_v9  ;;  %v229_v25 = vmul.f32 %v78_v14, %v29_v13  ;;  %v230_v30 = vmul.f32 %v82_v18, %v30_v17  ;;  %v19_v13 = vld [vmem:[%s424_s0 + $0x40] sm:$0xff]  ;;  %v61_v14 = vld [vmem:[%s425_s1 + $0x10] sm:$0xff] }
   0x9   :  { %v231_v34 = vmul.f32 %v86_v23, %v31_v22  ;;  %v98_v39 = vrot.slane %v59_v5, %v348_v29  ;;  %v232_v40 = vmul.f32 %v90_v28, %v32_v27  ;;  %v35_v42 = vunpack.c.l.bf16 %v15_v36 }
   0xa   :  { %v259_v31 = vadd.f32 %v228_v21, %v227_v20  ;;  %v102_v43 = vrot.slane %v60_v37, %v316_v3  ;;  %v233_v44 = vmul.f32 %v94_v33, %v33_v32  ;;  %v36_v47 = vunpack.c.h.bf16 %v15_v36  ;;  %v21_v36 = vld [vmem:[%s424_s0 + $0x50] sm:$0xff] }
   0xb   :  { %v106_v48 = vrot.slane %v60_v37, %v318_v4  ;;  %v234_v49 = vmul.f32 %v98_v39, %v34_v38  ;;  %v37_v51 = vunpack.c.l.bf16 %v16_v46  ;;  %v110_v52 = vrot.slane %v60_v37, %v323_v6 }
   0xc   :  { %v260_v35 = vadd.f32 %v259_v31, %v229_v25  ;;  %v235_v53 = vmul.f32 %v102_v43, %v35_v42  ;;  %v38_v56 = vunpack.c.h.bf16 %v16_v46  ;;  %v114_v57 = vrot.slane %v60_v37, %v330_v12 }
   0xd   :  { %v236_v58 = vmul.f32 %v106_v48, %v36_v47  ;;  %v39_v60 = vunpack.c.l.bf16 %v17_v55  ;;  %v118_v61 = vrot.slane %v60_v37, %v333_v15  ;;  %v237_v62 = vmul.f32 %v110_v52, %v37_v51 }
   0xe   :  { %v261_v41 = vadd.f32 %v260_v35, %v230_v30  ;;  %v40_v1 = vunpack.c.h.bf16 %v17_v55  ;;  %v122_v2 = vrot.slane %v60_v37, %v339_v19  ;;  %v238_v5 = vmul.f32 %v114_v57, %v38_v56  ;;  %v62_v55 = vld [vmem:[%s425_s1 + $0x18] sm:$0xff] }
   0xf   :  { %v41_v8 = vunpack.c.l.bf16 %v18_v0  ;;  %v126_v9 = vrot.slane %v60_v37, %v342_v24  ;;  %v239_v10 = vmul.f32 %v118_v61, %v39_v60  ;;  %v42_v16 = vunpack.c.h.bf16 %v18_v0  ;;  %v24_v0 = vld [vmem:[%s424_s0 + $0x68] sm:$0xff] }
  0x10   :  { %v262_v45 = vadd.f32 %v261_v41, %v231_v34  ;;  %v130_v17 = vrot.slane %v60_v37, %v348_v29  ;;  %v240_v18 = vmul.f32 %v122_v2, %v40_v1  ;;  %v43_v21 = vunpack.c.l.bf16 %v19_v13 }
  0x11   :  { %v134_v22 = vrot.slane %v61_v14, %v316_v3  ;;  %v241_v23 = vmul.f32 %v126_v9, %v41_v8  ;;  %v44_v27 = vunpack.c.h.bf16 %v19_v13  ;;  %v138_v28 = vrot.slane %v61_v14, %v318_v4 }
  0x12   :  { %v263_v50 = vadd.f32 %v262_v45, %v232_v40  ;;  %v242_v30 = vmul.f32 %v130_v17, %v42_v16  ;;  %v45_v32 = vunpack.c.l.bf16 %v20_v26  ;;  %v142_v33 = vrot.slane %v61_v14, %v323_v6  ;;  %v22_v45 = vld [vmem:[%s424_s0 + $0x58] sm:$0xff] }
  0x13   :  { %v243_v34 = vmul.f32 %v134_v22, %v43_v21  ;;  %v46_v37 = vunpack.c.h.bf16 %v20_v26  ;;  %v146_v38 = vrot.slane %v61_v14, %v330_v12  ;;  %v244_v39 = vmul.f32 %v138_v28, %v44_v27 }
  0x14   :  { %v264_v54 = vadd.f32 %v263_v50, %v233_v44  ;;  %v47_v41 = vunpack.c.l.bf16 %v21_v36  ;;  %v150_v42 = vrot.slane %v61_v14, %v333_v15  ;;  %v245_v43 = vmul.f32 %v142_v33, %v45_v32 }
  0x15   :  { %v48_v46 = vunpack.c.h.bf16 %v21_v36  ;;  %v154_v47 = vrot.slane %v61_v14, %v339_v19  ;;  %v246_v48 = vmul.f32 %v146_v38, %v46_v37  ;;  %v49_v50 = vunpack.c.l.bf16 %v22_v45 }
  0x16   :  { %v265_v59 = vadd.f32 %v264_v54, %v234_v49  ;;  %v158_v51 = vrot.slane %v61_v14, %v342_v24  ;;  %v247_v52 = vmul.f32 %v150_v42, %v47_v41  ;;  %v23_v54 = vld [vmem:[%s424_s0 + $0x60] sm:$0xff]  ;;  %v50_v56 = vunpack.c.h.bf16 %v22_v45 }
  0x17   :  { %v162_v57 = vrot.slane %v61_v14, %v348_v29  ;;  %v51_v60 = vunpack.c.l.bf16 %v23_v54  ;;  %v166_v61 = vrot.slane %v62_v55, %v316_v3  ;;  %v52_v1 = vunpack.c.h.bf16 %v23_v54  ;;  %v25_v3 = vld [vmem:[%s424_s0 + $0x70] sm:$0xff] }
  0x18   :  { %v266_v63 = vadd.f32 %v265_v59, %v235_v53  ;;  %v170_v2 = vrot.slane %v62_v55, %v318_v4  ;;  %v53_v8 = vunpack.c.l.bf16 %v24_v0  ;;  %v174_v9 = vrot.slane %v62_v55, %v323_v6  ;;  %v26_v6 = vld [vmem:[%s424_s0 + $0x78] sm:$0xff] }
  0x19   :  { %v54_v13 = vunpack.c.h.bf16 %v24_v0  ;;  %v178_v14 = vrot.slane %v62_v55, %v330_v12  ;;  %v56_v22 = vunpack.c.h.bf16 %v25_v3  ;;  %v57_v27 = vunpack.c.l.bf16 %v26_v6 }
  0x1a   :  { %v267_v7 = vadd.f32 %v266_v63, %v236_v58  ;;  %v248_v58 = vmul.f32 %v154_v47, %v48_v46  ;;  %v252_v16 = vmul.f32 %v170_v2, %v52_v1  ;;  %v253_v4 = vmul.f32 %v174_v9, %v53_v8 }
  0x1b   :  { %v190_v28 = vrot.slane %v62_v55, %v342_v24  ;;  %v194_v32 = vrot.slane %v62_v55, %v348_v29 }
  0x1c   :  { %v268_v11 = vadd.f32 %v267_v7, %v237_v62  ;;  %v249_v62 = vmul.f32 %v158_v51, %v49_v50 }
  0x1e   :  { %v269_v20 = vadd.f32 %v268_v11, %v238_v5  ;;  %v250_v5 = vmul.f32 %v162_v57, %v50_v56 }
  0x20   :  { %v270_v25 = vadd.f32 %v269_v20, %v239_v10  ;;  %v251_v10 = vmul.f32 %v166_v61, %v51_v60  ;;  %v182_v20 = vrot.slane %v62_v55, %v333_v15 }
  0x22   :  { %v271_v31 = vadd.f32 %v270_v25, %v240_v18  ;;  %v55_v18 = vunpack.c.l.bf16 %v25_v3  ;;  %v254_v25 = vmul.f32 %v178_v14, %v54_v13 }
  0x24   :  { %v272_v35 = vadd.f32 %v271_v31, %v241_v23  ;;  %v186_v23 = vrot.slane %v62_v55, %v339_v19  ;;  %v255_v12 = vmul.f32 %v182_v20, %v55_v18  ;;  %v58_v31 = vunpack.c.h.bf16 %v26_v6 }
  0x26   :  { %v273_v40 = vadd.f32 %v272_v35, %v242_v30  ;;  %v256_v15 = vmul.f32 %v186_v23, %v56_v22  ;;  %v258_v36 = vmul.f32 %v194_v32, %v58_v31 }
  0x28   :  { %v274_v44 = vadd.f32 %v273_v40, %v243_v34  ;;  %v257_v34 = vmul.f32 %v190_v28, %v57_v27 }
  0x2a   :  { %v275_v49 = vadd.f32 %v274_v44, %v244_v39 }
  0x2c   :  { %v276_v53 = vadd.f32 %v275_v49, %v245_v43 }
  0x2e   :  { %v277_v59 = vadd.f32 %v276_v53, %v246_v48 }
  0x30   :  { %v278_v63 = vadd.f32 %v277_v59, %v247_v52 }
  0x32   :  { %v279_v7 = vadd.f32 %v278_v63, %v248_v58 }
  0x34   :  { %v280_v11 = vadd.f32 %v279_v7, %v249_v62 }
  0x36   :  { %v281_v17 = vadd.f32 %v280_v11, %v250_v5 }
  0x38   :  { %v282_v21 = vadd.f32 %v281_v17, %v251_v10 }
  0x3a   :  { %v283_v26 = vadd.f32 %v282_v21, %v252_v16 }
  0x3c   :  { %v284_v30 = vadd.f32 %v283_v26, %v253_v4 }
  0x3e   :  { %v285_v33 = vadd.f32 %v284_v30, %v254_v25 }
  0x40   :  { %v286_v35 = vadd.f32 %v285_v33, %v255_v12 }
  0x42   :  { %v287_v37 = vadd.f32 %v286_v35, %v256_v15 }
  0x44   :  { %v288_v38 = vadd.f32 %v287_v37, %v257_v34 }
  0x46   :  { %v289_v39 = vadd.f32 %v288_v38, %v258_v36 }
  0x48   :  { %290 = vadd.xlane.f32.xlu0 %v289_v39 }
  0xd5   :  { %v291_v19 = vpop.xlane.xlu0 %290 }
  0xd6   :  { %293 = vst.msk [vmem:[%s426_s2] sm:$0xff] %vm292_vm0, %v291_v19 }

</bundles_post_ra>
